<compile_context>
chip_gen: v7x
topology: tpu7x:2x2x1
jax: 0.10.0
libtpu: 0.0.40
codegen_flags: <defaults>
</compile_context>

<pallas_src>
import functools

import jax
import jax.numpy as jnp
from jax import lax
from jax.experimental import pallas as pl
from jax.experimental.pallas import tpu as pltpu

LANE = 128


def _round_up(x, m):
    return ((x + m - 1) // m) * m


def _pick_row_tile(h):
    """Largest output-row tile that evenly divides H (whole image if small)."""
    if h <= 64:
        return h
    for cand in (64, 56, 48, 40, 32, 28, 24, 16, 8, 4, 2):
        if h % cand == 0:
            return cand
    return 1


# ----------------------------- Pallas kernel ------------------------------- #
def _conv_bn_relu_kernel(x_ref, w_ref, b_ref, o_ref, *, k, th, w_out, cin, cout_p):
    # x_ref: (1, 1, th + k - 1, w_out + k - 1, cin)  bf16 row-halo input tile
    # w_ref: (k, k, cin, cout_p)                     bf16 weight, BN scale folded in
    # b_ref: (1, cout_p)                             f32 folded BN bias
    # o_ref: (1, th, w_out, cout_p)                  f32 output tile
    xt = x_ref[0, 0, :, :, :]                               # (th+k-1, Wp, cin)
    acc = jnp.zeros((th * w_out, cout_p), jnp.float32)
    for dh in range(k):                                     # k*k shifted matmuls,
        for dw in range(k):                                 # accumulated in f32
            xs = xt[dh:dh + th, dw:dw + w_out, :].reshape(th * w_out, cin)
            acc = acc + jnp.dot(xs, w_ref[dh, dw, :, :],
                                preferred_element_type=jnp.float32)
    y = jnp.maximum(acc + b_ref[...], 0.0)                  # BN bias + ReLU epilogue
    o_ref[...] = y.reshape(1, th, w_out, cout_p).astype(o_ref.dtype)


# ------------------------------ Module wrapper ------------------------------ #
def conv_bn_relu(x_nchw, weight, gamma, beta, running_mean, running_var,
                 *, k=3, s=1, eps=1e-5):
    """Equivalent of Conv(in, out, ReLU, k, s).forward(x) with BatchNorm in eval mode.

    x_nchw : (N, Cin, H, W)    float32
    weight : (Cout, Cin, k, k) torch Conv2d layout
    """
    # TODO(synk): BatchNorm2d is implemented in eval mode (running stats folded);
    # training-mode batch statistics would need a second reduction pass.
    if s != 1:
        # TODO(synk): strided convolution not implemented in the Pallas path.
        raise NotImplementedError("only stride 1 is supported")
    assert k % 2 == 1, "odd kernel sizes only (padding = (k-1)//2)"

    N, Cin, H, W = x_nchw.shape
    Cout = weight.shape[0]
    p = (k - 1) // 2
    halo = k - 1
    Wp = W + 2 * p

    # ---- fold BN (eval mode): scale into weight, bias kept separate ----
    scale = gamma / jnp.sqrt(running_var + eps)                      # (Cout,)
    bias = beta - running_mean * scale                               # (Cout,)
    Cout_p = max(_round_up(Cout, LANE), LANE)
    w = jnp.transpose(weight, (2, 3, 1, 0)) * scale                  # (k,k,Cin,Cout)
    w = jnp.pad(w, ((0, 0), (0, 0), (0, 0), (0, Cout_p - Cout))).astype(jnp.bfloat16)
    b = jnp.pad(bias, (0, Cout_p - Cout)).reshape(1, Cout_p).astype(jnp.float32)

    # ---- NCHW -> NHWC, spatial pad, cast to bf16 ----
    x = jnp.transpose(x_nchw, (0, 2, 3, 1))                          # (N, H, W, Cin)
    xp = jnp.pad(x, ((0, 0), (p, p), (p, p), (0, 0))).astype(jnp.bfloat16)

    # ---- row-halo tiles: (N, T, TH+halo, Wp, Cin); tiny HBM overhead vs. im2col ----
    TH = _pick_row_tile(H)
    T = H // TH
    tiles = jnp.stack([xp[:, t * TH: t * TH + TH + halo] for t in range(T)], axis=1)

    # ---- compiler hints ----
    flops = 2 * N * H * W * Cout_p * (k * k * Cin)
    bytes_accessed = (tiles.size * 2 + w.size * 2 + b.size * 4
                      + N * H * W * Cout_p * 4)
    in_tile_bytes = (TH + halo) * Wp * Cin * 2
    out_tile_bytes = TH * W * Cout_p * 4
    w_bytes = k * k * Cin * Cout_p * 2
    vmem_limit = int(min(max(3 * (in_tile_bytes + out_tile_bytes) + 2 * w_bytes
                             + (2 << 20), 16 << 20), 64 << 20))

    kernel = functools.partial(_conv_bn_relu_kernel, k=k, th=TH, w_out=W,
                               cin=Cin, cout_p=Cout_p)

    out = pl.pallas_call(
        kernel,
        out_shape=jax.ShapeDtypeStruct((N, H, W, Cout_p), jnp.float32),
        grid_spec=pltpu.PrefetchScalarGridSpec(
            num_scalar_prefetch=0,
            grid=(N, T),
            in_specs=[
                pl.BlockSpec((1, 1, TH + halo, Wp, Cin),
                             lambda n, t: (n, t, 0, 0, 0)),
                pl.BlockSpec((k, k, Cin, Cout_p), lambda n, t: (0, 0, 0, 0)),
                pl.BlockSpec((1, Cout_p), lambda n, t: (0, 0)),
            ],
            out_specs=pl.BlockSpec((1, TH, W, Cout_p),
                                   lambda n, t: (n, t, 0, 0)),
        ),
        compiler_params=pltpu.CompilerParams(
            dimension_semantics=("parallel", "parallel"),
            vmem_limit_bytes=vmem_limit,
        ),
        cost_estimate=pl.CostEstimate(flops=flops,
                                      bytes_accessed=bytes_accessed,
                                      transcendentals=0),
    )(tiles, w, b)

    out = out[..., :Cout]                         # drop Cout lane padding
    return jnp.transpose(out, (0, 3, 1, 2))       # NHWC -> NCHW


# ------------------------------- Reference ---------------------------------- #
def conv_bn_relu_ref(x_nchw, weight, gamma, beta, running_mean, running_var,
                     *, k=3, s=1, eps=1e-5):
    p = (k - 1) // 2
    y = lax.conv_general_dilated(
        x_nchw, weight, window_strides=(s, s),
        padding=((p, p), (p, p)),
        dimension_numbers=("NCHW", "OIHW", "NCHW"))
    scale = (gamma / jnp.sqrt(running_var + eps)).reshape(1, -1, 1, 1)
    bias = (beta - running_mean * gamma / jnp.sqrt(running_var + eps)).reshape(1, -1, 1, 1)
    return jnp.maximum(y * scale + bias, 0.0)


# --------------------------------- main ------------------------------------- #
if __name__ == "__main__":
    key = jax.random.PRNGKey(0)
    k_x, k_w, k_g, k_b, k_m, k_v = jax.random.split(key, 6)

    N, Cin, H, W = 2, 4, 16, 16
    Cout, K, S = 8, 3, 1

    x = jax.random.normal(k_x, (N, Cin, H, W), dtype=jnp.float32)
    weight = 0.1 * jax.random.normal(k_w, (Cout, Cin, K, K), dtype=jnp.float32)
    gamma = 1.0 + 0.1 * jax.random.normal(k_g, (Cout,), dtype=jnp.float32)
    beta = 0.1 * jax.random.normal(k_b, (Cout,), dtype=jnp.float32)
    running_mean = 0.1 * jax.random.normal(k_m, (Cout,), dtype=jnp.float32)
    running_var = jnp.abs(jax.random.normal(k_v, (Cout,), dtype=jnp.float32)) + 1.0

    fn = jax.jit(functools.partial(conv_bn_relu, k=K, s=S))
    out = fn(x, weight, gamma, beta, running_mean, running_var)
    out = jax.block_until_ready(out)

    ref = conv_bn_relu_ref(x, weight, gamma, beta, running_mean, running_var, k=K, s=S)
    assert out.shape == (N, Cout, H, W)
    # bf16 matmul inputs with f32 accumulation -> looser tolerance than pure f32.
    assert jnp.allclose(out, ref, atol=5e-2, rtol=5e-2), "mismatch vs reference"

    print("KERNEL_OK")
</pallas_src>

<mosaic_0001>
module attributes {stable_mosaic.version = 11 : i64} {
  func.func @_conv_bn_relu_kernel(%arg0: i32, %arg1: i32, %arg2: memref<1x1x18x18x4xbf16, #tpu.memory_space<vmem>>, %arg3: memref<3x3x4x128xbf16, #tpu.memory_space<vmem>>, %arg4: memref<1x128xf32, #tpu.memory_space<vmem>>, %arg5: memref<1x16x16x128xf32, #tpu.memory_space<vmem>>) attributes {dimension_semantics = [#tpu.dimension_semantics<parallel>, #tpu.dimension_semantics<parallel>], iteration_bounds = array<i64: 2, 1>, scalar_prefetch = 0 : i64, scratch_operands = 0 : i64, tpu.core_type = #tpu.core_type<tc>, window_params = [{transform_indices = @transform_0, window_bounds = array<i64: 1, 1, 18, 18, 4>}, {pipeline_mode = #tpu.pipeline_mode<synchronous>, transform_indices = @transform_1, window_bounds = array<i64: 3, 3, 4, 128>}, {pipeline_mode = #tpu.pipeline_mode<synchronous>, transform_indices = @transform_2, window_bounds = array<i64: 1, 128>}, {transform_indices = @transform_3, window_bounds = array<i64: 1, 16, 16, 128>}]} {
    %c0 = arith.constant 0 : index
    %c0_0 = arith.constant 0 : index
    %c0_1 = arith.constant 0 : index
    %c0_2 = arith.constant 0 : index
    %c0_3 = arith.constant 0 : index
    %0 = vector.load %arg2[%c0, %c0_0, %c0_1, %c0_2, %c0_3] : memref<1x1x18x18x4xbf16, #tpu.memory_space<vmem>>, vector<1x1x18x18x4xbf16>
    %1 = vector.shape_cast %0 : vector<1x1x18x18x4xbf16> to vector<18x18x4xbf16>
    %cst = arith.constant 0.000000e+00 : f32
    %2 = vector.broadcast %cst : f32 to vector<256x128xf32>
    %3 = vector.extract_strided_slice %1 {offsets = [0, 0, 0], sizes = [16, 16, 4], strides = [1, 1, 1]} : vector<18x18x4xbf16> to vector<16x16x4xbf16>
    %4 = vector.shape_cast %3 : vector<16x16x4xbf16> to vector<256x4xbf16>
    %c0_4 = arith.constant 0 : index
    %c0_5 = arith.constant 0 : index
    %c0_6 = arith.constant 0 : index
    %c0_7 = arith.constant 0 : index
    %5 = vector.load %arg3[%c0_4, %c0_5, %c0_6, %c0_7] : memref<3x3x4x128xbf16, #tpu.memory_space<vmem>>, vector<1x1x4x128xbf16>
    %6 = vector.shape_cast %5 : vector<1x1x4x128xbf16> to vector<4x128xbf16>
    %cst_8 = arith.constant dense<0.000000e+00> : vector<256x128xf32>
    %7 = tpu.matmul %4, %6, %cst_8 {dimension_numbers = #tpu.dot_dimension_numbers<[1], [0], [0], [1], [0, 0, 1, 1], [], []>} : vector<256x4xbf16>, vector<4x128xbf16>, vector<256x128xf32> -> vector<256x128xf32>
    %8 = arith.addf %2, %7 : vector<256x128xf32>
    %9 = vector.extract_strided_slice %1 {offsets = [0, 1, 0], sizes = [16, 16, 4], strides = [1, 1, 1]} : vector<18x18x4xbf16> to vector<16x16x4xbf16>
    %10 = vector.shape_cast %9 : vector<16x16x4xbf16> to vector<256x4xbf16>
    %c0_9 = arith.constant 0 : index
    %c1 = arith.constant 1 : index
    %c0_10 = arith.constant 0 : index
    %c0_11 = arith.constant 0 : index
    %11 = vector.load %arg3[%c0_9, %c1, %c0_10, %c0_11] : memref<3x3x4x128xbf16, #tpu.memory_space<vmem>>, vector<1x1x4x128xbf16>
    %12 = vector.shape_cast %11 : vector<1x1x4x128xbf16> to vector<4x128xbf16>
    %cst_12 = arith.constant dense<0.000000e+00> : vector<256x128xf32>
    %13 = tpu.matmul %10, %12, %cst_12 {dimension_numbers = #tpu.dot_dimension_numbers<[1], [0], [0], [1], [0, 0, 1, 1], [], []>} : vector<256x4xbf16>, vector<4x128xbf16>, vector<256x128xf32> -> vector<256x128xf32>
    %14 = arith.addf %8, %13 : vector<256x128xf32>
    %15 = vector.extract_strided_slice %1 {offsets = [0, 2, 0], sizes = [16, 16, 4], strides = [1, 1, 1]} : vector<18x18x4xbf16> to vector<16x16x4xbf16>
    %16 = vector.shape_cast %15 : vector<16x16x4xbf16> to vector<256x4xbf16>
    %c0_13 = arith.constant 0 : index
    %c2 = arith.constant 2 : index
    %c0_14 = arith.constant 0 : index
    %c0_15 = arith.constant 0 : index
    %17 = vector.load %arg3[%c0_13, %c2, %c0_14, %c0_15] : memref<3x3x4x128xbf16, #tpu.memory_space<vmem>>, vector<1x1x4x128xbf16>
    %18 = vector.shape_cast %17 : vector<1x1x4x128xbf16> to vector<4x128xbf16>
    %cst_16 = arith.constant dense<0.000000e+00> : vector<256x128xf32>
    %19 = tpu.matmul %16, %18, %cst_16 {dimension_numbers = #tpu.dot_dimension_numbers<[1], [0], [0], [1], [0, 0, 1, 1], [], []>} : vector<256x4xbf16>, vector<4x128xbf16>, vector<256x128xf32> -> vector<256x128xf32>
    %20 = arith.addf %14, %19 : vector<256x128xf32>
    %21 = vector.extract_strided_slice %1 {offsets = [1, 0, 0], sizes = [16, 16, 4], strides = [1, 1, 1]} : vector<18x18x4xbf16> to vector<16x16x4xbf16>
    %22 = vector.shape_cast %21 : vector<16x16x4xbf16> to vector<256x4xbf16>
    %c1_17 = arith.constant 1 : index
    %c0_18 = arith.constant 0 : index
    %c0_19 = arith.constant 0 : index
    %c0_20 = arith.constant 0 : index
    %23 = vector.load %arg3[%c1_17, %c0_18, %c0_19, %c0_20] : memref<3x3x4x128xbf16, #tpu.memory_space<vmem>>, vector<1x1x4x128xbf16>
    %24 = vector.shape_cast %23 : vector<1x1x4x128xbf16> to vector<4x128xbf16>
    %cst_21 = arith.constant dense<0.000000e+00> : vector<256x128xf32>
    %25 = tpu.matmul %22, %24, %cst_21 {dimension_numbers = #tpu.dot_dimension_numbers<[1], [0], [0], [1], [0, 0, 1, 1], [], []>} : vector<256x4xbf16>, vector<4x128xbf16>, vector<256x128xf32> -> vector<256x128xf32>
    %26 = arith.addf %20, %25 : vector<256x128xf32>
    %27 = vector.extract_strided_slice %1 {offsets = [1, 1, 0], sizes = [16, 16, 4], strides = [1, 1, 1]} : vector<18x18x4xbf16> to vector<16x16x4xbf16>
    %28 = vector.shape_cast %27 : vector<16x16x4xbf16> to vector<256x4xbf16>
    %c1_22 = arith.constant 1 : index
    %c1_23 = arith.constant 1 : index
    %c0_24 = arith.constant 0 : index
    %c0_25 = arith.constant 0 : index
    %29 = vector.load %arg3[%c1_22, %c1_23, %c0_24, %c0_25] : memref<3x3x4x128xbf16, #tpu.memory_space<vmem>>, vector<1x1x4x128xbf16>
    %30 = vector.shape_cast %29 : vector<1x1x4x128xbf16> to vector<4x128xbf16>
    %cst_26 = arith.constant dense<0.000000e+00> : vector<256x128xf32>
    %31 = tpu.matmul %28, %30, %cst_26 {dimension_numbers = #tpu.dot_dimension_numbers<[1], [0], [0], [1], [0, 0, 1, 1], [], []>} : vector<256x4xbf16>, vector<4x128xbf16>, vector<256x128xf32> -> vector<256x128xf32>
    %32 = arith.addf %26, %31 : vector<256x128xf32>
    %33 = vector.extract_strided_slice %1 {offsets = [1, 2, 0], sizes = [16, 16, 4], strides = [1, 1, 1]} : vector<18x18x4xbf16> to vector<16x16x4xbf16>
    %34 = vector.shape_cast %33 : vector<16x16x4xbf16> to vector<256x4xbf16>
    %c1_27 = arith.constant 1 : index
    %c2_28 = arith.constant 2 : index
    %c0_29 = arith.constant 0 : index
    %c0_30 = arith.constant 0 : index
    %35 = vector.load %arg3[%c1_27, %c2_28, %c0_29, %c0_30] : memref<3x3x4x128xbf16, #tpu.memory_space<vmem>>, vector<1x1x4x128xbf16>
    %36 = vector.shape_cast %35 : vector<1x1x4x128xbf16> to vector<4x128xbf16>
    %cst_31 = arith.constant dense<0.000000e+00> : vector<256x128xf32>
    %37 = tpu.matmul %34, %36, %cst_31 {dimension_numbers = #tpu.dot_dimension_numbers<[1], [0], [0], [1], [0, 0, 1, 1], [], []>} : vector<256x4xbf16>, vector<4x128xbf16>, vector<256x128xf32> -> vector<256x128xf32>
    %38 = arith.addf %32, %37 : vector<256x128xf32>
    %39 = vector.extract_strided_slice %1 {offsets = [2, 0, 0], sizes = [16, 16, 4], strides = [1, 1, 1]} : vector<18x18x4xbf16> to vector<16x16x4xbf16>
    %40 = vector.shape_cast %39 : vector<16x16x4xbf16> to vector<256x4xbf16>
    %c2_32 = arith.constant 2 : index
    %c0_33 = arith.constant 0 : index
    %c0_34 = arith.constant 0 : index
    %c0_35 = arith.constant 0 : index
    %41 = vector.load %arg3[%c2_32, %c0_33, %c0_34, %c0_35] : memref<3x3x4x128xbf16, #tpu.memory_space<vmem>>, vector<1x1x4x128xbf16>
    %42 = vector.shape_cast %41 : vector<1x1x4x128xbf16> to vector<4x128xbf16>
    %cst_36 = arith.constant dense<0.000000e+00> : vector<256x128xf32>
    %43 = tpu.matmul %40, %42, %cst_36 {dimension_numbers = #tpu.dot_dimension_numbers<[1], [0], [0], [1], [0, 0, 1, 1], [], []>} : vector<256x4xbf16>, vector<4x128xbf16>, vector<256x128xf32> -> vector<256x128xf32>
    %44 = arith.addf %38, %43 : vector<256x128xf32>
    %45 = vector.extract_strided_slice %1 {offsets = [2, 1, 0], sizes = [16, 16, 4], strides = [1, 1, 1]} : vector<18x18x4xbf16> to vector<16x16x4xbf16>
    %46 = vector.shape_cast %45 : vector<16x16x4xbf16> to vector<256x4xbf16>
    %c2_37 = arith.constant 2 : index
    %c1_38 = arith.constant 1 : index
    %c0_39 = arith.constant 0 : index
    %c0_40 = arith.constant 0 : index
    %47 = vector.load %arg3[%c2_37, %c1_38, %c0_39, %c0_40] : memref<3x3x4x128xbf16, #tpu.memory_space<vmem>>, vector<1x1x4x128xbf16>
    %48 = vector.shape_cast %47 : vector<1x1x4x128xbf16> to vector<4x128xbf16>
    %cst_41 = arith.constant dense<0.000000e+00> : vector<256x128xf32>
    %49 = tpu.matmul %46, %48, %cst_41 {dimension_numbers = #tpu.dot_dimension_numbers<[1], [0], [0], [1], [0, 0, 1, 1], [], []>} : vector<256x4xbf16>, vector<4x128xbf16>, vector<256x128xf32> -> vector<256x128xf32>
    %50 = arith.addf %44, %49 : vector<256x128xf32>
    %51 = vector.extract_strided_slice %1 {offsets = [2, 2, 0], sizes = [16, 16, 4], strides = [1, 1, 1]} : vector<18x18x4xbf16> to vector<16x16x4xbf16>
    %52 = vector.shape_cast %51 : vector<16x16x4xbf16> to vector<256x4xbf16>
    %c2_42 = arith.constant 2 : index
    %c2_43 = arith.constant 2 : index
    %c0_44 = arith.constant 0 : index
    %c0_45 = arith.constant 0 : index
    %53 = vector.load %arg3[%c2_42, %c2_43, %c0_44, %c0_45] : memref<3x3x4x128xbf16, #tpu.memory_space<vmem>>, vector<1x1x4x128xbf16>
    %54 = vector.shape_cast %53 : vector<1x1x4x128xbf16> to vector<4x128xbf16>
    %cst_46 = arith.constant dense<0.000000e+00> : vector<256x128xf32>
    %55 = tpu.matmul %52, %54, %cst_46 {dimension_numbers = #tpu.dot_dimension_numbers<[1], [0], [0], [1], [0, 0, 1, 1], [], []>} : vector<256x4xbf16>, vector<4x128xbf16>, vector<256x128xf32> -> vector<256x128xf32>
    %56 = arith.addf %50, %55 : vector<256x128xf32>
    %c0_47 = arith.constant 0 : index
    %c0_48 = arith.constant 0 : index
    %57 = vector.load %arg4[%c0_47, %c0_48] : memref<1x128xf32, #tpu.memory_space<vmem>>, vector<1x128xf32>
    %58 = vector.broadcast %57 : vector<1x128xf32> to vector<256x128xf32>
    %59 = arith.addf %56, %58 : vector<256x128xf32>
    %cst_49 = arith.constant 0.000000e+00 : f32
    %60 = vector.broadcast %cst_49 : f32 to vector<256x128xf32>
    %61 = arith.maximumf %59, %60 : vector<256x128xf32>
    %62 = vector.shape_cast %61 : vector<256x128xf32> to vector<1x16x16x128xf32>
    %c0_50 = arith.constant 0 : index
    %c0_51 = arith.constant 0 : index
    %c0_52 = arith.constant 0 : index
    %c0_53 = arith.constant 0 : index
    %63 = vector.load %arg5[%c0_50, %c0_51, %c0_52, %c0_53] : memref<1x16x16x128xf32, #tpu.memory_space<vmem>>, vector<1x16x16x128xf32>
    tpu.vector_store %arg5[%c0_50, %c0_51, %c0_52, %c0_53], %62 {strides = array<i32>} : memref<1x16x16x128xf32, #tpu.memory_space<vmem>>, vector<1x16x16x128xf32>,
    return
  }
  func.func @transform_0(%arg0: i32, %arg1: i32) -> (i32, i32, i32, i32, i32) {
    %c0_i32 = arith.constant 0 : i32
    %c0_i32_0 = arith.constant 0 : i32
    %c0_i32_1 = arith.constant 0 : i32
    %c0_i32_2 = arith.constant 0 : i32
    return %arg0, %arg1, %c0_i32, %c0_i32_0, %c0_i32_1 : i32, i32, i32, i32, i32
  }
  func.func @transform_1(%arg0: i32, %arg1: i32) -> (i32, i32, i32, i32) {
    %c0_i32 = arith.constant 0 : i32
    %c0_i32_0 = arith.constant 0 : i32
    %c0_i32_1 = arith.constant 0 : i32
    %c0_i32_2 = arith.constant 0 : i32
    %c0_i32_3 = arith.constant 0 : i32
    return %c0_i32, %c0_i32_0, %c0_i32_1, %c0_i32_2 : i32, i32, i32, i32
  }
  func.func @transform_2(%arg0: i32, %arg1: i32) -> (i32, i32) {
    %c0_i32 = arith.constant 0 : i32
    %c0_i32_0 = arith.constant 0 : i32
    %c0_i32_1 = arith.constant 0 : i32
    return %c0_i32, %c0_i32_0 : i32, i32
  }
  func.func @transform_3(%arg0: i32, %arg1: i32) -> (i32, i32, i32, i32) {
    %c0_i32 = arith.constant 0 : i32
    %c0_i32_0 = arith.constant 0 : i32
    %c0_i32_1 = arith.constant 0 : i32
    return %arg0, %arg1, %c0_i32, %c0_i32_0 : i32, i32, i32, i32
  }
}

</mosaic_0001>

<bundles_post_ra>
// kernel: conv_bn_relu.1
= control target key start
LH: loop header
LB: loop body
LE: loop exit
PB: predicated region body
PF: predicated region fallthrough
CT: control target
= control target key end

     0   :  { %s4179_s12 = smov 0   ;;  %s4181_s13 = smov 0   ;;  %s5248_s0 = inlined_call_operand.vmem [shape: bf16[2,1,18,18,4], index: 0, kind: input, shape index: {}]   ;;  %s5249_s1 = inlined_call_operand.vmem [shape: bf16[3,3,4,128], index: 1, kind: input, shape index: {}]   ;;  %s5250_s2 = inlined_call_operand.vmem [shape: f32[1,128], index: 2, kind: input, shape index: {}]   ;;  %s5251_s3 = inlined_call_operand.vmem [shape: f32[2,16,16,128], index: 3, kind: output, shape index: {}]  }
   0x1   :  { %s4183_s14 = smov 0  }
   0x2 LB: > { %s25_s15 = sadd.s32 1, %s4153_s13  ;;  %p3129_p0 = scmp.ge.s32.totalorder %s4157_s14, 1  ;;  %s4157_s14 = sphi %s4183_s14, %s13_s14   ;;  %s4153_s13 = sphi %s4181_s13, %s5330_s13   ;;  %s4149_s12 = sphi %s4179_s12, %s5329_s12  }
   0x3   : > { %p27_p1 = scmp.ge.s32.totalorder %s25_s15, 2  ;;  %p157_p2 = scmp.lt.s32.totalorder %s4157_s14, 3 }
   0x5   : > { %s5332_s15 = smov (%p27_p1, %s25_s15), 0  ;;  %p158_p3 = pnand %p3129_p0, %p157_p2 }
   0x7   : > { %161 = sbr.rel (%p158_p3) target bundleno = 554 (0x22a), region = 32 }
   0xe   : > { %v3133_v0 = vld [vmem:[%s5249_s1 + $0x2] sm:$0x3]  ;;  %vm752_vm0 = vcmask 1041408   ;;  %v3265_v1 = vld [vmem:[%s5249_s1 + $0x8] sm:$0x3]  ;;  %p190_p4 = scmp.lt.s32.totalorder %s4149_s12, 1 }
   0xf   : > { %4078 = vmatprep.subr.msk.bf16.mxu1 %vm752_vm0, %v3133_v0  ;;  %4082 = vmatprep.subr.msk.bf16.mxu0 %vm752_vm0, %v3265_v1  ;;  %v754_v2 = vsel %vm752_vm0, %v3133_v0, 0  ;;  %v4207_v3 = vsel %vm752_vm0, %v3265_v1, 0  ;;  %v265_v4 = vld [vmem:[%s5249_s1] sm:$0x3]  ;;  %v3284_v5 = vld [vmem:[%s5249_s1 + $0xa] sm:$0x3] }
  0x10   : > { %5283 = vst [vmem:[#allocation2_spill] sm:$0xff] %v4207_v3  ;;  %3515 = vmatpush3.bf16.msra.mxu1 %v754_v2  ;;  %3651 = vmatpush3.bf16.msra.mxu0 %v4207_v3  ;;  %s5334_s12 = smov (!%p190_p4, %s4149_s12), 1  ;;  %vm266_vm1 = vsmask.f32 3328  ;;  %vm267_vm2 = vsmask.f32 7440 }
  0x11   : > { %4079 = vmatprep.subr.msk.bf16.mxu1 %vm752_vm0, %v265_v4  ;;  %4084 = vmatprep.subr.msk.bf16.mxu0 %vm752_vm0, %v3284_v5  ;;  %s4088_s24 = smul.u32 216, %s5334_s12  ;;  %v4227_v6 = vsel %vm752_vm0, %v265_v4, 0  ;;  %v4230_v7 = vsel %vm752_vm0, %v3284_v5, 0  ;;  %v4235_v8 = vld [vmem:[%s5249_s1 + $0xc] sm:$0x3]  ;;  %vm703_vm3 = vcmask 31744   ;;  %vm4271_vm4 = vmor %vm266_vm1, %vm267_vm2 }
  0x12   : > { %v4259_v20 = vsel %vm752_vm0, %v4235_v8, 0  ;;  %vm1225_vm5 = vcmask 1042432   ;;  %vm1226_vm6 = vcmask 1046532   ;;  %s3360_s19 = sshll.u32 %s5334_s12, 8 }
  0x13   : > { %s4224_s27 = scalar_lea.vmem %s5248_s0, %s4088_s24  ;;  %vm4452_vm7 = vmor %vm1225_vm5, %vm1226_vm6  ;;  %s5170_s22 = scalar_lea.vmem %s5251_s3, %s3360_s19 }
  0x14   : > { %v4238_v9 = vld [vmem:[%s4224_s27] sm:$0xf]  ;;  %v4241_v10 = vld [vmem:[%s4224_s27 + $0x4] sm:$0xf]  ;;  %v213_v11 = vld [vmem:[%s4224_s27 + $0x8] sm:$0x1] }
  0x15   : > { %v270_v12 = vshrl.u32 %v4238_v9, 16  ;;  %v273_v13 = vshll.u32 %v4238_v9, 16  ;;  %v279_v14 = vshll.u32 %v4241_v10, 16  ;;  %v283_v15 = vshrl.u32 %v4241_v10, 16  ;;  %v4249_v16 = vld [vmem:[%s4224_s27 + $0xc] sm:$0xf] }
  0x16   : > { %v289_v17 = vshll.u32 %v213_v11, 16  ;;  %v4252_v18 = vld [vmem:[%s4224_s27 + $0x10] sm:$0xf]  ;;  %v4255_v19 = vld [vmem:[%s4224_s27 + $0x14] sm:$0x1]  ;;  %v294_v26 = vshrl.u32 %v4249_v16, 16 }
  0x17   : > { %v272_v21 = vrot.slane %v270_v12, 4  ;;  %v275_v22 = vrot.slane %v273_v13, 5  ;;  %v281_v23 = vrot.slane %v279_v14, 5  ;;  %v285_v24 = vrot.slane %v283_v15, 4  ;;  %v4267_v33 = vld [vmem:[%s4224_s27 + $0x18] sm:$0xf] }
  0x18   : > { %v291_v25 = vrot.slane %v289_v17, 5  ;;  %v297_v27 = vshll.u32 %v4249_v16, 16  ;;  %v303_v28 = vshll.u32 %v4252_v18, 16  ;;  %v307_v31 = vshrl.u32 %v4252_v18, 16  ;;  %v4280_v39 = vld [vmem:[%s4224_s27 + $0x1c] sm:$0xf] }
  0x19   : > { %v276_v29 = vor.u32 %v275_v22, %v272_v21  ;;  %v286_v30 = vor.u32 %v285_v24, %v281_v23  ;;  %v313_v32 = vshll.u32 %v4255_v19, 16  ;;  %v296_v35 = vrot.slane %v294_v26, 4  ;;  %v4284_v46 = vld [vmem:[%s4224_s27 + $0x20] sm:$0x1]  ;;  %v4294_v57 = vld [vmem:[%s4224_s27 + $0x24] sm:$0xf] }
  0x1a   : > { %v299_v36 = vrot.slane %v297_v27, 5  ;;  %v305_v37 = vrot.slane %v303_v28, 5  ;;  %v4277_v38 = vcombine.low %v4249_v16, %v4252_v18  ;;  %v309_v42 = vrot.slane %v307_v31, 4  ;;  %v4299_v62 = vld [vmem:[%s4224_s27 + $0x28] sm:$0xf] }
  0x1b   : > { %v277_v40 = vrot.slane %v276_v29, 4  ;;  %v287_v41 = vrot.slane %v286_v30, 4  ;;  %v315_v43 = vrot.slane %v313_v32, 5  ;;  %v1240_v45 = vrot.slane %v4255_v19, 5  ;;  %v4307_v4 = vld [vmem:[%s4224_s27 + $0x2c] sm:$0x1] }
  0x1c   : > { %v300_v44 = vor.u32 %v299_v36, %v296_v35  ;;  %v318_v47 = vshrl.u32 %v4267_v33, 16  ;;  %v321_v48 = vshll.u32 %v4267_v33, 16  ;;  %v310_v51 = vor.u32 %v309_v42, %v305_v37  ;;  %v4313_v14 = vld [vmem:[%s4224_s27 + $0x30] sm:$0xf]  ;;  %v4325_v28 = vld [vmem:[%s4224_s27 + $0x34] sm:$0xf] }
  0x1d   : > { %v282_v49 = vsel %vm4271_vm4, %v277_v40, %v281_v23  ;;  %v292_v50 = vsel %vm4271_vm4, %v287_v41, %v291_v25  ;;  %v327_v52 = vshll.u32 %v4280_v39, 16  ;;  %v331_v60 = vshrl.u32 %v4280_v39, 16  ;;  %v4320_v23 = vld [vmem:[%s5249_s1 + $0x4] sm:$0x3]  ;;  %v4332_v32 = vld [vmem:[%s4224_s27 + $0x38] sm:$0x1] }
  0x1e   : > { %v3134_v53 = vcombine.low %v282_v49, %v292_v50  ;;  %v301_v54 = vrot.slane %v300_v44, 4  ;;  %v320_v55 = vrot.slane %v318_v47, 4  ;;  %v323_v56 = vrot.slane %v321_v48, 5  ;;  %v4340_v48 = vld [vmem:[%s4224_s27 + $0x3c] sm:$0xf] }
  0x1f   : > { %v311_v58 = vrot.slane %v310_v51, 4  ;;  %v329_v59 = vrot.slane %v327_v52, 5  ;;  %v337_v61 = vshll.u32 %v4284_v46, 16  ;;  %v1244_v1 = vrot.slane %v4280_v39, 5  ;;  %v4348_v52 = vld [vmem:[%s4224_s27 + $0x40] sm:$0xf] }
  0x20   : > { %3516 = vmatprep.mubr.msk.bf16.mxu1 %vm703_vm3, %v3134_v53  ;;  %v306_v63 = vsel %vm4271_vm4, %v301_v54, %v305_v37  ;;  %v324_v0 = vor.u32 %v323_v56, %v320_v55  ;;  %v1247_v2 = vrot.slane %v4284_v46, 5  ;;  %v333_v11 = vrot.slane %v331_v60, 4 }
  0x21   : > { %v316_v5 = vsel %vm4271_vm4, %v311_v58, %v315_v43  ;;  %v339_v12 = vrot.slane %v337_v61, 5  ;;  %v342_v13 = vshrl.u32 %v4294_v57, 16  ;;  %v345_v21 = vshll.u32 %v4294_v57, 16 }
  0x22   : > { %v3135_v15 = vcombine.low %v306_v63, %v316_v5  ;;  %v325_v17 = vrot.slane %v324_v0, 4  ;;  %v351_v22 = vshll.u32 %v4299_v62, 16  ;;  %v334_v24 = vor.u32 %v333_v11, %v329_v59  ;;  %v4360_v5 = vld [vmem:[%s4224_s27 + $0x44] sm:$0x1] }
  0x23   : > { %v344_v25 = vrot.slane %v342_v13, 4  ;;  %v355_v26 = vshrl.u32 %v4299_v62, 16  ;;  %v361_v27 = vshll.u32 %v4307_v4, 16  ;;  %v347_v30 = vrot.slane %v345_v21, 5  ;;  %v4365_v13 = vld [vmem:[%s4224_s27 + $0x48] sm:$0xf] }
  0x24   : > { %3652 = vmatprep.mubr.msk.bf16.mxu0 %vm703_vm3, %v3135_v15  ;;  %3517 = vmatmul.mubr.msk.bf16.vlgmr.msra.gmra.mrb[0].mxu1 %vm703_vm3, %v3135_v15  ;;  %v330_v29 = vsel %vm4271_vm4, %v325_v17, %v329_v59  ;;  %v353_v31 = vrot.slane %v351_v22, 5  ;;  %v366_v35 = vshrl.u32 %v4313_v14, 16  ;;  %v335_v36 = vrot.slane %v334_v24, 4  ;;  %v4372_v24 = vld [vmem:[%s4224_s27 + $0x4c] sm:$0xf] }
  0x25   : > { %3549 = vmatpush3.bf16.msra.mxu1 %v4227_v6  ;;  %v357_v37 = vrot.slane %v355_v26, 4  ;;  %v363_v40 = vrot.slane %v361_v27, 5  ;;  %v369_v41 = vshll.u32 %v4313_v14, 16  ;;  %v348_v42 = vor.u32 %v347_v30, %v344_v25 }
  0x26   : > { %v368_v43 = vrot.slane %v366_v35, 4  ;;  %v375_v44 = vshll.u32 %v4325_v28, 16  ;;  %v379_v47 = vshrl.u32 %v4325_v28, 16  ;;  %4080 = vmatprep.subr.msk.bf16.mxu1 %vm752_vm0, %v4320_v23  ;;  %v340_v49 = vsel %vm4271_vm4, %v335_v36, %v339_v12 }
  0x27   : > { %v358_v6 = vor.u32 %v357_v37, %v353_v31  ;;  %v371_v50 = vrot.slane %v369_v41, 5  ;;  %v385_v51 = vshll.u32 %v4332_v32, 16  ;;  %v4350_v53 = vcombine.low %v330_v29, %v340_v49 }
  0x28   : > { %v349_v54 = vrot.slane %v348_v42, 4  ;;  %v377_v55 = vrot.slane %v375_v44, 5  ;;  %v381_v56 = vrot.slane %v379_v47, 4  ;;  %v390_v61 = vshrl.u32 %v4340_v48, 16  ;;  %v4394_v42 = vld [vmem:[%s4224_s27 + $0x54] sm:$0xf] }
  0x29   : > { %5286 = vst [vmem:[#allocation3_spill] sm:$0xff] %v4350_v53  ;;  %v359_v58 = vrot.slane %v358_v6, 4  ;;  %v372_v59 = vor.u32 %v371_v50, %v368_v43  ;;  %v387_v60 = vrot.slane %v385_v51, 5  ;;  %3653 = vmatmul.mubr.msk.bf16.vlgmr.msra.gmra.mrb[0].mxu0 %vm703_vm3, %v4350_v53  ;;  %3520 = vmatprep.mubr.msk.bf16.mxu1 %vm703_vm3, %v4350_v53  ;;  %v393_v11 = vshll.u32 %v4340_v48, 16  ;;  %5288 = vst [vmem:[#allocation5_spill] sm:$0xff] %v4394_v42 }
  0x2a   : > { %v354_v63 = vsel %vm4271_vm4, %v349_v54, %v353_v31  ;;  %v382_v0 = vor.u32 %v381_v56, %v377_v55  ;;  %v399_v12 = vshll.u32 %v4348_v52, 16  ;;  %3685 = vmatpush3.bf16.msra.mxu0 %v4230_v7  ;;  %v392_v21 = vrot.slane %v390_v61, 4  ;;  %v4399_v6 = vld [vmem:[%s4224_s27 + $0x58] sm:$0xf] }
  0x2b   : > { %v364_v15 = vsel %vm4271_vm4, %v359_v58, %v363_v40  ;;  %v373_v17 = vrot.slane %v372_v59, 4  ;;  %v403_v22 = vshrl.u32 %v4348_v52, 16  ;;  %v395_v27 = vrot.slane %v393_v11, 5  ;;  %4085 = vmatprep.subr.msk.bf16.mxu0 %vm752_vm0, %v4235_v8  ;;  %v4389_v8 = vld [vmem:[%s4224_s27 + $0x50] sm:$0x1] }
  0x2c   : > { %v4374_v25 = vcombine.low %v354_v63, %v364_v15  ;;  %v383_v26 = vrot.slane %v382_v0, 4  ;;  %v401_v29 = vrot.slane %v399_v12, 5  ;;  %v409_v31 = vshll.u32 %v4360_v5, 16  ;;  %v4412_v11 = vld [vmem:[%s4224_s27 + $0x5c] sm:$0x1] }
  0x2d   : > { %v378_v7 = vsel %vm4271_vm4, %v373_v17, %v377_v55  ;;  %v405_v30 = vrot.slane %v403_v22, 4  ;;  %v414_v35 = vshrl.u32 %v4365_v13, 16  ;;  %v396_v37 = vor.u32 %v395_v27, %v392_v21  ;;  %v4416_v15 = vld [vmem:[%s4224_s27 + $0x60] sm:$0xf]  ;;  %v4421_v27 = vld [vmem:[%s4224_s27 + $0x64] sm:$0xf] }
  0x2e   : > { %5287 = vst [vmem:[#allocation4_spill] sm:$0xff] %v4374_v25  ;;  %3656 = vmatprep.mubr.msk.bf16.mxu0 %vm703_vm3, %v4374_v25  ;;  %3521 = vmatmul.mubr.msk.bf16.gmra.mrb[4].mxu1 %vm703_vm3, %v4374_v25  ;;  %v388_v36 = vsel %vm4271_vm4, %v383_v26, %v387_v60  ;;  %v417_v40 = vshll.u32 %v4365_v13, 16  ;;  %v423_v41 = vshll.u32 %v4372_v24, 16  ;;  %v411_v47 = vrot.slane %v409_v31, 5  ;;  %v4633_v25 = vld [vmem:[%s4224_s27 + $0xa8] sm:$0xf] }
  0x2f   : > { %v4396_v43 = vcombine.low %v378_v7, %v388_v36  ;;  %v406_v44 = vor.u32 %v405_v30, %v401_v29  ;;  %v416_v49 = vrot.slane %v414_v35, 4  ;;  %v397_v50 = vrot.slane %v396_v37, 4 }
  0x30   : > { %v419_v51 = vrot.slane %v417_v40, 5  ;;  %v425_v54 = vrot.slane %v423_v41, 5  ;;  %v427_v55 = vshrl.u32 %v4372_v24, 16  ;;  %v433_v58 = vshll.u32 %v4389_v8, 16 }
  0x31   : > { %5289 = vst [vmem:[#allocation6_spill] sm:$0xff] %v4396_v43  ;;  %3524 = vmatprep.mubr.msk.bf16.mxu1 %vm703_vm3, %v4396_v43  ;;  %v407_v56 = vrot.slane %v406_v44, 4  ;;  %v438_v59 = vshrl.u32 %v4394_v42, 16  ;;  %v441_v60 = vshll.u32 %v4394_v42, 16  ;;  %3657 = vmatmul.mubr.msk.bf16.gmra.mrb[4].mxu0 %vm703_vm3, %v4396_v43  ;;  %v402_v61 = vsel %vm4271_vm4, %v397_v50, %v401_v29 }
  0x32   : > { %v420_v63 = vor.u32 %v419_v51, %v416_v49  ;;  %v429_v0 = vrot.slane %v427_v55, 4  ;;  %v447_v12 = vshll.u32 %v4399_v6, 16  ;;  %v435_v21 = vrot.slane %v433_v58, 5 }
  0x33   : > { %v412_v17 = vsel %vm4271_vm4, %v407_v56, %v411_v47  ;;  %v440_v22 = vrot.slane %v438_v59, 4  ;;  %v443_v26 = vrot.slane %v441_v60, 5  ;;  %v451_v36 = vshrl.u32 %v4399_v6, 16  ;;  %v4435_v47 = vld [vmem:[%s4224_s27 + $0x68] sm:$0x1] }
  0x34   : > { %v4423_v7 = vcombine.low %v402_v61, %v412_v17  ;;  %v421_v29 = vrot.slane %v420_v63, 4  ;;  %v430_v30 = vor.u32 %v429_v0, %v425_v54  ;;  %v449_v31 = vrot.slane %v447_v12, 5 }
  0x35   : > { %v444_v35 = vor.u32 %v443_v26, %v440_v22  ;;  %v457_v37 = vshll.u32 %v4412_v11, 16  ;;  %v462_v40 = vshrl.u32 %v4416_v15, 16  ;;  %v465_v49 = vshll.u32 %v4416_v15, 16 }
  0x36   : > { %5290 = vst [vmem:[#allocation7_spill] sm:$0xff] %v4423_v7  ;;  %3660 = vmatprep.mubr.msk.bf16.mxu0 %vm703_vm3, %v4423_v7  ;;  %3525 = vmatmul.mubr.msk.bf16.gmra.mrb[8].mxu1 %vm703_vm3, %v4423_v7  ;;  %v426_v41 = vsel %vm4271_vm4, %v421_v29, %v425_v54  ;;  %v431_v44 = vrot.slane %v430_v30, 4  ;;  %v471_v50 = vshll.u32 %v4421_v27, 16  ;;  %v453_v55 = vrot.slane %v451_v36, 4  ;;  %v4443_v54 = vld [vmem:[%s4224_s27 + $0x6c] sm:$0xf] }
  0x37   : > { %v445_v51 = vrot.slane %v444_v35, 4  ;;  %v459_v56 = vrot.slane %v457_v37, 5  ;;  %v464_v58 = vrot.slane %v462_v40, 4  ;;  %v467_v60 = vrot.slane %v465_v49, 5  ;;  %v4459_v36 = vld [vmem:[%s4224_s27 + $0x70] sm:$0xf] }
  0x38   : > { %v436_v59 = vsel %vm4271_vm4, %v431_v44, %v435_v21  ;;  %v473_v61 = vrot.slane %v471_v50, 5  ;;  %v475_v63 = vshrl.u32 %v4421_v27, 16  ;;  %v454_v17 = vor.u32 %v453_v55, %v449_v31  ;;  %v4610_v7 = vld [vmem:[%s4224_s27 + $0xa0] sm:$0xf] }
  0x39   : > { %v4445_v0 = vcombine.low %v426_v41, %v436_v59  ;;  %v450_v12 = vsel %vm4271_vm4, %v445_v51, %v449_v31  ;;  %v481_v22 = vshll.u32 %v4435_v47, 16  ;;  %v468_v21 = vor.u32 %v467_v60, %v464_v58  ;;  %v4472_v51 = vld [vmem:[%s4224_s27 + $0x74] sm:$0x1] }
  0x3a   : > { %v477_v29 = vrot.slane %v475_v63, 4  ;;  %v3199_v30 = vrot.slane %v4249_v16, 9  ;;  %v1237_v35 = vrot.slane %v4252_v18, 5  ;;  %v455_v31 = vrot.slane %v454_v17, 4 }
  0x3b   : > { %5291 = vst [vmem:[#allocation8_spill] sm:$0xff] %v4445_v0  ;;  %3661 = vmatmul.mubr.msk.bf16.gmra.mrb[8].mxu0 %vm703_vm3, %v4445_v0  ;;  %3528 = vmatprep.mubr.msk.bf16.mxu1 %vm703_vm3, %v4445_v0  ;;  %v483_v37 = vrot.slane %v481_v22, 5  ;;  %v486_v40 = vshrl.u32 %v4443_v54, 16  ;;  %v489_v41 = vshll.u32 %v4443_v54, 16  ;;  %v469_v44 = vrot.slane %v468_v21, 4 }
  0x3c   : > { %v478_v49 = vor.u32 %v477_v29, %v473_v61  ;;  %v1238_v16 = vsel %vm4452_vm7, %v3199_v30, %v1237_v35  ;;  %v1239_v18 = vrot.slane %v1237_v35, 4  ;;  %v460_v50 = vsel %vm4271_vm4, %v455_v31, %v459_v56  ;;  %v4484_v56 = vld [vmem:[%s4224_s27 + $0x78] sm:$0xf]  ;;  %v4500_v31 = vld [vmem:[%s4224_s27 + $0x7c] sm:$0xf] }
  0x3d   : > { %v488_v55 = vrot.slane %v486_v40, 4  ;;  %v491_v58 = vrot.slane %v489_v41, 5  ;;  %v495_v59 = vshll.u32 %v4459_v36, 16  ;;  %v4475_v60 = vcombine.low %v450_v12, %v460_v50 }
  0x3e   : > { %v474_v63 = vsel %vm4271_vm4, %v469_v44, %v473_v61  ;;  %v479_v17 = vrot.slane %v478_v49, 4  ;;  %v1241_v22 = vsel %vm4452_vm7, %v1239_v18, %v1240_v45  ;;  %v499_v35 = vshrl.u32 %v4459_v36, 16  ;;  %v4505_v49 = vld [vmem:[%s4224_s27 + $0x80] sm:$0x1] }
  0x3f   : > { %5294 = vst [vmem:[#allocation9_spill] sm:$0xff] %v4475_v60  ;;  %v4486_v21 = vcombine.low %v1238_v16, %v1241_v22  ;;  %v492_v29 = vor.u32 %v491_v58, %v488_v55  ;;  %v497_v30 = vrot.slane %v495_v59, 5  ;;  %3664 = vmatprep.mubr.msk.bf16.mxu0 %vm703_vm3, %v4475_v60  ;;  %3529 = vmatmul.mubr.msk.bf16.gmra.mrb[12].mxu1 %vm703_vm3, %v4475_v60  ;;  %v505_v45 = vshll.u32 %v4472_v51, 16  ;;  %v4603_v60 = vld [vmem:[%s4224_s27 + $0x9c] sm:$0xf] }
  0x40   : > { %v484_v19 = vsel %vm4271_vm4, %v479_v17, %v483_v37  ;;  %v3200_v61 = vrot.slane %v4267_v33, 9  ;;  %v1246_v12 = vrot.slane %v1244_v1, 4  ;;  %v501_v44 = vrot.slane %v499_v35, 4 }
  0x41   : > { %5295 = vst [vmem:[#allocation10_spill] sm:$0xff] %v4486_v21  ;;  %v4502_v40 = vcombine.low %v474_v63, %v484_v19  ;;  %v493_v41 = vrot.slane %v492_v29, 4  ;;  %v510_v16 = vshrl.u32 %v4484_v56, 16  ;;  %v507_v18 = vrot.slane %v505_v45, 5  ;;  %v4531_v29 = vld [vmem:[%s4224_s27 + $0x84] sm:$0xf] }
  0x42   : > { %v1245_v37 = vsel %vm4452_vm7, %v3200_v61, %v1244_v1  ;;  %v1248_v50 = vsel %vm4452_vm7, %v1246_v12, %v1247_v2  ;;  %v513_v55 = vshll.u32 %v4484_v56, 16  ;;  %v502_v59 = vor.u32 %v501_v44, %v497_v30 }
  0x43   : > { %5296 = vst [vmem:[#allocation11_spill] sm:$0xff] %v4502_v40  ;;  %3665 = vmatmul.mubr.msk.bf16.gmra.mrb[12].mxu0 %vm703_vm3, %v4502_v40  ;;  %3532 = vmatprep.mubr.msk.bf16.mxu1 %vm703_vm3, %v4502_v40  ;;  %v498_v58 = vsel %vm4271_vm4, %v493_v41, %v497_v30  ;;  %v4523_v63 = vcombine.low %v1245_v37, %v1248_v50  ;;  %v512_v1 = vrot.slane %v510_v16, 4  ;;  %v519_v2 = vshll.u32 %v4500_v31, 16  ;;  %v4537_v16 = vld [vmem:[%s4224_s27 + $0x88] sm:$0xf] }
  0x44   : > { %3686 = vmatprep.mubr.msk.bf16.mxu0 %vm703_vm3, %v4486_v21  ;;  %v515_v46 = vrot.slane %v513_v55, 5  ;;  %v523_v17 = vshrl.u32 %v4500_v31, 16  ;;  %v529_v22 = vshll.u32 %v4505_v49, 16  ;;  %v503_v35 = vrot.slane %v502_v59, 4 }
  0x45   : > { %5297 = vst [vmem:[#allocation12_spill] sm:$0xff] %v4523_v63  ;;  %v3201_v30 = vrot.slane %v4294_v57, 9  ;;  %v1251_v19 = vrot.slane %v4299_v62, 5  ;;  %v1254_v45 = vrot.slane %v4307_v4, 5  ;;  %v521_v12 = vrot.slane %v519_v2, 5 }
  0x46   : > { %v516_v61 = vor.u32 %v515_v46, %v512_v1  ;;  %v525_v41 = vrot.slane %v523_v17, 4  ;;  %v531_v44 = vrot.slane %v529_v22, 5  ;;  %v508_v37 = vsel %vm4271_vm4, %v503_v35, %v507_v18  ;;  %v4547_v1 = vld [vmem:[%s4224_s27 + $0x8c] sm:$0x1] }
  0x47   : > { %v1252_v50 = vsel %vm4452_vm7, %v3201_v30, %v1251_v19  ;;  %v1253_v55 = vrot.slane %v1251_v19, 4  ;;  %v534_v59 = vshrl.u32 %v4531_v29, 16  ;;  %v4544_v3 = vcombine.low %v498_v58, %v508_v37 }
  0x48   : > { %v517_v40 = vrot.slane %v516_v61, 4  ;;  %v526_v4 = vor.u32 %v525_v41, %v521_v12  ;;  %v537_v46 = vshll.u32 %v4531_v29, 16  ;;  %v543_v18 = vshll.u32 %v4537_v16, 16  ;;  %v4561_v61 = vld [vmem:[%s4224_s27 + $0x90] sm:$0xf] }
  0x49   : > { %5298 = vst [vmem:[#allocation13_spill] sm:$0xff] %v4544_v3  ;;  %v1255_v2 = vsel %vm4452_vm7, %v1253_v55, %v1254_v45  ;;  %v536_v17 = vrot.slane %v534_v59, 4  ;;  %v547_v22 = vshrl.u32 %v4537_v16, 16  ;;  %3533 = vmatmul.mubr.msk.bf16.gmra.mrb[16].mxu1 %vm703_vm3, %v4544_v3  ;;  %v4566_v45 = vld [vmem:[%s5249_s1 + $0xe] sm:$0x3]  ;;  %v1258_v59 = vrot.slane %v4325_v28, 5 }
  0x4a   : > { %v522_v58 = vsel %vm4271_vm4, %v517_v40, %v521_v12  ;;  %v527_v35 = vrot.slane %v526_v4, 4  ;;  %v4558_v30 = vcombine.low %v1252_v50, %v1255_v2  ;;  %v539_v19 = vrot.slane %v537_v46, 5  ;;  %5300 = vst [vmem:[#allocation15_spill] sm:$0xff] %v4566_v45  ;;  %v4580_v46 = vld [vmem:[%s4224_s27 + $0x94] sm:$0xf] }
  0x4b   : > { %3687 = vmatmul.mubr.msk.bf16.vlgmr.msra.gmra.mrb[0].mxu0 %vm703_vm3, %v4523_v63  ;;  %v545_v41 = vrot.slane %v543_v18, 5  ;;  %v549_v37 = vrot.slane %v547_v22, 4  ;;  %v553_v40 = vshll.u32 %v4547_v1, 16  ;;  %v3202_v12 = vrot.slane %v4313_v14, 9  ;;  %v4585_v3 = vld [vmem:[%s4224_s27 + $0x98] sm:$0x1] }
  0x4c   : > { %5299 = vst [vmem:[#allocation14_spill] sm:$0xff] %v4558_v30  ;;  %3719 = vmatpush3.bf16.msra.mxu0 %v4259_v20  ;;  %v532_v50 = vsel %vm4271_vm4, %v527_v35, %v531_v44  ;;  %3690 = vmatprep.mubr.msk.bf16.mxu0 %vm703_vm3, %v4558_v30  ;;  %v540_v55 = vor.u32 %v539_v19, %v536_v17  ;;  %v1261_v4 = vrot.slane %v4332_v32, 5  ;;  %v558_v20 = vshrl.u32 %v4561_v61, 16 }
  0x4d   : > { %v4582_v2 = vcombine.low %v522_v58, %v532_v50  ;;  %v550_v18 = vor.u32 %v549_v37, %v545_v41  ;;  %v555_v22 = vrot.slane %v553_v40, 5  ;;  %4086 = vmatprep.subr.msk.bf16.mxu0 %vm752_vm0, %v4566_v45  ;;  %v1259_v17 = vsel %vm4452_vm7, %v3202_v12, %v1258_v59 }
  0x4e   : > { %v541_v44 = vrot.slane %v540_v55, 4  ;;  %v1260_v35 = vrot.slane %v1258_v59, 4  ;;  %v561_v32 = vshll.u32 %v4561_v61, 16  ;;  %v560_v19 = vrot.slane %v558_v20, 4 }
  0x4f   : > { %5301 = vst [vmem:[#allocation16_spill] sm:$0xff] %v4582_v2  ;;  %3536 = vmatprep.mubr.msk.bf16.mxu1 %vm703_vm3, %v4582_v2  ;;  %v551_v58 = vrot.slane %v550_v18, 4  ;;  %v567_v37 = vshll.u32 %v4580_v46, 16  ;;  %v571_v40 = vshrl.u32 %v4580_v46, 16  ;;  %v577_v59 = vshll.u32 %v4585_v3, 16 }
  0x50   : > { %v546_v50 = vsel %vm4271_vm4, %v541_v44, %v545_v41  ;;  %v1262_v55 = vsel %vm4452_vm7, %v1260_v35, %v1261_v4  ;;  %v563_v12 = vrot.slane %v561_v32, 5  ;;  %v3203_v4 = vrot.slane %v4340_v48, 9 }
  0x51   : > { %v556_v2 = vsel %vm4271_vm4, %v551_v58, %v555_v22  ;;  %v4607_v18 = vcombine.low %v1259_v17, %v1262_v55  ;;  %v569_v20 = vrot.slane %v567_v37, 5  ;;  %v573_v0 = vrot.slane %v571_v40, 4  ;;  %v4623_v58 = vld [vmem:[%s4224_s27 + $0xa4] sm:$0x1] }
  0x52   : > { %v4612_v43 = vcombine.low %v546_v50, %v556_v2  ;;  %v564_v41 = vor.u32 %v563_v12, %v560_v19  ;;  %v579_v44 = vrot.slane %v577_v59, 5  ;;  %v1265_v32 = vrot.slane %v4348_v52, 5 }
  0x53   : > { %5302 = vst [vmem:[#allocation17_spill] sm:$0xff] %v4607_v18  ;;  %3691 = vmatmul.mubr.msk.bf16.gmra.mrb[4].mxu0 %vm703_vm3, %v4607_v18  ;;  %v574_v35 = vor.u32 %v573_v0, %v569_v20  ;;  %v1268_v22 = vrot.slane %v4360_v5, 5  ;;  %v582_v17 = vshrl.u32 %v4603_v60, 16  ;;  %v585_v19 = vshll.u32 %v4603_v60, 16 }
  0x54   : > { %5303 = vst [vmem:[#allocation18_spill] sm:$0xff] %v4612_v43  ;;  %3537 = vmatmul.mubr.msk.bf16.gmra.mrb[20].mxu1 %vm703_vm3, %v4612_v43  ;;  %v565_v2 = vrot.slane %v564_v41, 4  ;;  %v591_v37 = vshll.u32 %v4610_v7, 16  ;;  %v595_v0 = vshrl.u32 %v4610_v7, 16  ;;  %v1266_v5 = vsel %vm4452_vm7, %v3203_v4, %v1265_v32 }
  0x55   : > { %v575_v40 = vrot.slane %v574_v35, 4  ;;  %v1267_v50 = vrot.slane %v1265_v32, 4  ;;  %v584_v55 = vrot.slane %v582_v17, 4  ;;  %v587_v59 = vrot.slane %v585_v19, 5  ;;  %v4642_v32 = vld [vmem:[%s4224_s27 + $0xac] sm:$0xf] }
  0x56   : > { %v570_v12 = vsel %vm4271_vm4, %v565_v2, %v569_v20  ;;  %v593_v41 = vrot.slane %v591_v37, 5  ;;  %v597_v43 = vrot.slane %v595_v0, 4  ;;  %v601_v35 = vshll.u32 %v4623_v58, 16 }
  0x57   : > { %v580_v53 = vsel %vm4271_vm4, %v575_v40, %v579_v44  ;;  %v1269_v18 = vsel %vm4452_vm7, %v1267_v50, %v1268_v22  ;;  %v3204_v4 = vrot.slane %v4365_v13, 9  ;;  %v588_v2 = vor.u32 %v587_v59, %v584_v55 }
  0x58   : > { %v4644_v17 = vcombine.low %v570_v12, %v580_v53  ;;  %v4646_v20 = vcombine.low %v1266_v5, %v1269_v18  ;;  %v598_v19 = vor.u32 %v597_v43, %v593_v41  ;;  %v603_v37 = vrot.slane %v601_v35, 5  ;;  %v4656_v18 = vld [vmem:[%s4224_s27 + $0xb0] sm:$0x1] }
  0x59   : > { %v1272_v0 = vrot.slane %v4372_v24, 5  ;;  %v1275_v44 = vrot.slane %v4389_v8, 5  ;;  %v606_v22 = vshrl.u32 %v4633_v25, 16  ;;  %v589_v53 = vrot.slane %v588_v2, 4 }
  0x5a   : > { %5304 = vst [vmem:[#allocation19_spill] sm:$0xff] %v4644_v17  ;;  %5305 = vst [vmem:[#allocation20_spill] sm:$0xff] %v4646_v20  ;;  %3540 = vmatprep.mubr.msk.bf16.mxu1 %vm703_vm3, %v4644_v17  ;;  %3694 = vmatprep.mubr.msk.bf16.mxu0 %vm703_vm3, %v4646_v20  ;;  %v599_v40 = vrot.slane %v598_v19, 4  ;;  %v609_v43 = vshll.u32 %v4633_v25, 16  ;;  %v615_v5 = vshll.u32 %v4642_v32, 16  ;;  %v619_v12 = vshrl.u32 %v4642_v32, 16 }
  0x5b   : > { %v1273_v8 = vsel %vm4452_vm7, %v3204_v4, %v1272_v0  ;;  %v1274_v50 = vrot.slane %v1272_v0, 4  ;;  %v608_v55 = vrot.slane %v606_v22, 4  ;;  %v594_v59 = vsel %vm4271_vm4, %v589_v53, %v593_v41  ;;  %v4668_v17 = vld [vmem:[%s4224_s27 + $0xb4] sm:$0xf]  ;;  %v4680_v53 = vld [vmem:[%s4224_s27 + $0xb8] sm:$0xf] }
  0x5c   : > { %v604_v35 = vsel %vm4271_vm4, %v599_v40, %v603_v37  ;;  %v611_v2 = vrot.slane %v609_v43, 5  ;;  %v617_v19 = vrot.slane %v615_v5, 5  ;;  %v621_v0 = vrot.slane %v619_v12, 4 }
  0x5d   : > { %v4670_v20 = vcombine.low %v594_v59, %v604_v35  ;;  %v1276_v4 = vsel %vm4452_vm7, %v1274_v50, %v1275_v44  ;;  %v625_v22 = vshll.u32 %v4656_v18, 16  ;;  %v3205_v41 = vrot.slane %v4394_v42, 9  ;;  %v4686_v44 = vld [vmem:[%s4224_s27 + $0xbc] sm:$0x1] }
  0x5e   : > { %v4675_v30 = vcombine.low %v1273_v8, %v1276_v4  ;;  %v612_v63 = vor.u32 %v611_v2, %v608_v55  ;;  %v1279_v37 = vrot.slane %v4399_v6, 5  ;;  %v622_v40 = vor.u32 %v621_v0, %v617_v19 }
  0x5f   : > { %5306 = vst [vmem:[#allocation21_spill] sm:$0xff] %v4670_v20  ;;  %3541 = vmatmul.mubr.msk.bf16.gmra.mrb[24].mxu1 %vm703_vm3, %v4670_v20  ;;  %v627_v43 = vrot.slane %v625_v22, 5  ;;  %v1282_v5 = vrot.slane %v4412_v11, 5  ;;  %v630_v50 = vshrl.u32 %v4668_v17, 16  ;;  %v633_v59 = vshll.u32 %v4668_v17, 16 }
  0x60   : > { %5307 = vst [vmem:[#allocation22_spill] sm:$0xff] %v4675_v30  ;;  %3695 = vmatmul.mubr.msk.bf16.gmra.mrb[8].mxu0 %vm703_vm3, %v4675_v30  ;;  %v613_v8 = vrot.slane %v612_v63, 4  ;;  %v1280_v55 = vsel %vm4452_vm7, %v3205_v41, %v1279_v37  ;;  %v1281_v12 = vrot.slane %v1279_v37, 4  ;;  %v623_v35 = vrot.slane %v622_v40, 4 }
  0x61   : > { %v632_v2 = vrot.slane %v630_v50, 4  ;;  %v639_v4 = vshll.u32 %v4680_v53, 16  ;;  %v643_v11 = vshrl.u32 %v4680_v53, 16  ;;  %v635_v20 = vrot.slane %v633_v59, 5 }
  0x62   : > { %v618_v0 = vsel %vm4271_vm4, %v613_v8, %v617_v19  ;;  %v1283_v22 = vsel %vm4452_vm7, %v1281_v12, %v1282_v5  ;;  %v649_v63 = vshll.u32 %v4686_v44, 16  ;;  %v628_v41 = vsel %vm4271_vm4, %v623_v35, %v627_v43 }
  0x63   : > { %v4703_v37 = vcombine.low %v1280_v55, %v1283_v22  ;;  %v641_v40 = vrot.slane %v639_v4, 5  ;;  %v645_v50 = vrot.slane %v643_v11, 4  ;;  %v4705_v30 = vcombine.low %v618_v0, %v628_v41 }
  0x64   : > { %v636_v21 = vor.u32 %v635_v20, %v632_v2  ;;  %v651_v45 = vrot.slane %v649_v63, 5  ;;  %v3206_v42 = vrot.slane %v4416_v15, 9  ;;  %v1286_v5 = vrot.slane %v4421_v27, 5 }
  0x65   : > { %3698 = vmatprep.mubr.msk.bf16.mxu0 %vm703_vm3, %v4703_v37  ;;  %v646_v19 = vor.u32 %v645_v50, %v641_v40  ;;  %v1289_v8 = vrot.slane %v4435_v47, 5  ;;  %v3207_v43 = vrot.slane %v4443_v54, 9  ;;  %3544 = vmatprep.mubr.msk.bf16.mxu1 %vm703_vm3, %v4705_v30  ;;  %v3166_v20 = vcombine.low %v4238_v9, %v4241_v10 }
  0x66   : > { %v637_v55 = vrot.slane %v636_v21, 4  ;;  %v1293_v12 = vrot.slane %v4459_v36, 5  ;;  %v1296_v59 = vrot.slane %v4472_v51, 5  ;;  %v1287_v2 = vsel %vm4452_vm7, %v3206_v42, %v1286_v5 }
  0x67   : > { %v647_v35 = vrot.slane %v646_v19, 4  ;;  %v1288_v4 = vrot.slane %v1286_v5, 4  ;;  %v1300_v47 = vrot.slane %v4500_v31, 5  ;;  %v3208_v9 = vrot.slane %v4484_v56, 9 }
  0x68   : > { %v642_v11 = vsel %vm4271_vm4, %v637_v55, %v641_v40  ;;  %v1294_v21 = vsel %vm4452_vm7, %v3207_v43, %v1293_v12  ;;  %v1295_v0 = vrot.slane %v1293_v12, 4  ;;  %v1303_v42 = vrot.slane %v4505_v49, 5 }
  0x69   : > { %v652_v10 = vsel %vm4271_vm4, %v647_v35, %v651_v45  ;;  %v1290_v51 = vsel %vm4452_vm7, %v1288_v4, %v1289_v8  ;;  %v1302_v22 = vrot.slane %v1300_v47, 4  ;;  %v3209_v19 = vrot.slane %v4531_v29, 9 }
  0x6a   : > { %v4732_v63 = vcombine.low %v642_v11, %v652_v10  ;;  %v4734_v41 = vcombine.low %v1287_v2, %v1290_v51  ;;  %v1297_v40 = vsel %vm4452_vm7, %v1295_v0, %v1296_v59  ;;  %v1307_v5 = vrot.slane %v4537_v16, 5 }
  0x6b   : > { %v4738_v50 = vcombine.low %v1294_v21, %v1297_v40  ;;  %v1310_v49 = vrot.slane %v4547_v1, 5  ;;  %v1301_v45 = vsel %vm4452_vm7, %v3208_v9, %v1300_v47  ;;  %v1304_v8 = vsel %vm4452_vm7, %v1302_v22, %v1303_v42 }
  0x6c   : > { %3545 = vmatmul.mubr.msk.bf16.gmra.mrb[28].mxu1 %vm703_vm3, %v4732_v63  ;;  %3699 = vmatmul.mubr.msk.bf16.gmra.mrb[12].mxu0 %vm703_vm3, %v4734_v41  ;;  %v1309_v43 = vrot.slane %v1307_v5, 4  ;;  %v1314_v55 = vrot.slane %v4580_v46, 5  ;;  %v1321_v12 = vrot.slane %v4610_v7, 5  ;;  %v1308_v59 = vsel %vm4452_vm7, %v3209_v19, %v1307_v5 }
  0x6d   : > { %3550 = vmatprep.mubr.msk.bf16.mxu1 %vm703_vm3, %v3166_v20  ;;  %3702 = vmatprep.mubr.msk.bf16.mxu0 %vm703_vm3, %v4738_v50  ;;  %v4760_v20 = vcombine.low %v1301_v45, %v1304_v8  ;;  %v3210_v35 = vrot.slane %v4561_v61, 9  ;;  %v1317_v4 = vrot.slane %v4585_v3, 5  ;;  %v4766_v47 = vcombine.low %v4267_v33, %v4280_v39  ;;  %v4778_v3 = vld [vmem:[%s5249_s1 + $0x6] sm:$0x3] }
  0x6e   : > { %v1311_v1 = vsel %vm4452_vm7, %v1309_v43, %v1310_v49  ;;  %v1316_v2 = vrot.slane %v1314_v55, 4  ;;  %v3211_v11 = vrot.slane %v4603_v60, 9  ;;  %v1439_v21 = vsel %vm752_vm0, %v4320_v23, 0 }
  0x6f   : > { %v4771_v0 = vcombine.low %v1308_v59, %v1311_v1  ;;  %v1323_v9 = vrot.slane %v1321_v12, 4  ;;  %v1324_v10 = vrot.slane %v4623_v58, 5  ;;  %v1328_v51 = vrot.slane %v4642_v32, 5 }
  0x70   : > { %v1315_v33 = vsel %vm4452_vm7, %v3210_v35, %v1314_v55  ;;  %v1318_v39 = vsel %vm4452_vm7, %v1316_v2, %v1317_v4  ;;  %v4792_v23 = vcombine.low %v4294_v57, %v4299_v62  ;;  %v1322_v58 = vsel %vm4452_vm7, %v3211_v11, %v1321_v12 }
  0x71   : > { %v4798_v22 = vcombine.low %v4416_v15, %v4421_v27  ;;  %v1325_v42 = vsel %vm4452_vm7, %v1323_v9, %v1324_v10  ;;  %v3212_v40 = vrot.slane %v4633_v25, 9  ;;  %v1335_v19 = vrot.slane %v4680_v53, 5 }
  0x72   : > { %v4808_v57 = vcombine.low %v4443_v54, %v4459_v36  ;;  %v4812_v62 = vcombine.low %v1315_v33, %v1318_v39  ;;  %v1330_v15 = vrot.slane %v1328_v51, 4  ;;  %v1331_v27 = vrot.slane %v4656_v18, 5  ;;  %v261_v18 = vld [vmem:[%s4224_s27 + $0xc8] sm:$0x1] }
  0x73   : > { %v4817_v5 = vcombine.low %v4484_v56, %v4500_v31  ;;  %v4821_v49 = vcombine.low %v4531_v29, %v4537_v16  ;;  %v4825_v54 = vcombine.low %v4561_v61, %v4580_v46  ;;  %v4829_v36 = vcombine.low %v4603_v60, %v4610_v7  ;;  %v4848_v61 = vld [vmem:[%s4224_s27 + $0xc4] sm:$0xf] }
  0x74   : > { %3551 = vmatmul.mubr.msk.bf16.vlgmr.msra.gmra.mrb[0].mxu1 %vm703_vm3, %v4277_v38  ;;  %3703 = vmatmul.mubr.msk.bf16.gmra.mrb[16].mxu0 %vm703_vm3, %v4760_v20  ;;  %v4833_v45 = vcombine.low %v4633_v25, %v4642_v32  ;;  %v4837_v56 = vcombine.low %v4313_v14, %v4325_v28  ;;  %v4839_v31 = vcombine.low %v1322_v58, %v1325_v42  ;;  %v3213_v16 = vrot.slane %v4668_v17, 9  ;;  %v5308_v42 = vld [vmem:[#allocation5_spill] sm:$0xff] }
  0x75   : > { %3583 = vmatpush3.bf16.msra.mxu1 %v1439_v21  ;;  %3554 = vmatprep.mubr.msk.bf16.mxu1 %vm703_vm3, %v4766_v47  ;;  %v4843_v29 = vcombine.low %v4668_v17, %v4680_v53  ;;  %v1337_v7 = vrot.slane %v1335_v19, 4  ;;  %v1338_v60 = vrot.slane %v4686_v44, 5  ;;  %v1329_v14 = vsel %vm4452_vm7, %v3212_v40, %v1328_v51  ;;  %v4868_v17 = vld [vmem:[%s4224_s27 + $0xc0] sm:$0xf] }
  0x76   : > { %3706 = vmatprep.mubr.msk.bf16.mxu0 %vm703_vm3, %v4771_v0  ;;  %4081 = vmatprep.subr.msk.bf16.mxu1 %vm752_vm0, %v4778_v3  ;;  %v1332_v28 = vsel %vm4452_vm7, %v1330_v15, %v1331_v27  ;;  %v2071_v25 = vrot.slane %v4848_v61, 5  ;;  %v1336_v46 = vsel %vm4452_vm7, %v3213_v16, %v1335_v19  ;;  %v4873_v53 = vcombine.low %v4340_v48, %v4348_v52 }
  0x77   : > { %v1339_v32 = vsel %vm4452_vm7, %v1337_v7, %v1338_v60  ;;  %v4875_v44 = vcombine.low %v1329_v14, %v1332_v28  ;;  %v4879_v8 = vcombine.low %v4365_v13, %v4372_v24  ;;  %v1841_v43 = vshrl.u32 %v4868_v17, 16  ;;  %v3339_v60 = vld [vmem:[%s5249_s1 + $0x10] sm:$0x3]  ;;  %v4131_v14 = vld [vmem:[%s4224_s27 + $0x4] sm:$0xf] }
  0x78   : > { %v1844_v55 = vshll.u32 %v4868_v17, 16  ;;  %v1850_v12 = vshll.u32 %v4848_v61, 16  ;;  %v1854_v59 = vshrl.u32 %v4848_v61, 16  ;;  %v4885_v1 = vcombine.low %v1336_v46, %v1339_v32  ;;  %v4133_v32 = vld [vmem:[%s4224_s27] sm:$0xf] }
  0x79   : > { %v3283_v35 = vrot.slane %v4868_v17, 9  ;;  %v2073_v48 = vrot.slane %v2071_v25, 4  ;;  %v2074_v52 = vrot.slane %v261_v18, 5  ;;  %v1843_v2 = vrot.slane %v1841_v43, 4 }
  0x7a   : > { %v1846_v4 = vrot.slane %v1844_v55, 5  ;;  %v1852_v11 = vrot.slane %v1850_v12, 5  ;;  %v1856_v21 = vrot.slane %v1854_v59, 4  ;;  %v1860_v9 = vshll.u32 %v261_v18, 16 }
  0x7b   : > { %v2072_v10 = vsel %vm4452_vm7, %v3283_v35, %v2071_v25  ;;  %v2075_v51 = vsel %vm4452_vm7, %v2073_v48, %v2074_v52  ;;  %v4902_v40 = vcombine.low %v5308_v42, %v4399_v6  ;;  %v5309_v6 = vld [vmem:[#allocation15_spill] sm:$0xff]  ;;  %v1230_v28 = vrot.slane %v4131_v14, 5  ;;  %v5310_v48 = vld [vmem:[#allocation10_spill] sm:$0xff]  ;;  %v5311_v52 = vld [vmem:[#allocation12_spill] sm:$0xff] }
  0x7c   : > { %3555 = vmatmul.mubr.msk.bf16.gmra.mrb[4].mxu1 %vm703_vm3, %v4792_v23  ;;  %3707 = vmatmul.mubr.msk.bf16.gmra.mrb[20].mxu0 %vm703_vm3, %v4812_v62  ;;  %v1847_v13 = vor.u32 %v1846_v4, %v1843_v2  ;;  %v1857_v24 = vor.u32 %v1856_v21, %v1852_v11  ;;  %v1862_v58 = vrot.slane %v1860_v9, 5  ;;  %v4904_v19 = vcombine.low %v2072_v10, %v2075_v51  ;;  %v4132_v25 = vld [vmem:[%s4224_s27 + $0x8] sm:$0x1]  ;;  %v5313_v4 = vld [vmem:[#allocation17_spill] sm:$0xff]  ;;  %v5314_v21 = vld [vmem:[#allocation20_spill] sm:$0xff] }
  0x7d   : > { %3558 = vmatprep.mubr.msk.bf16.mxu1 %vm703_vm3, %v4837_v56  ;;  %3710 = vmatprep.mubr.msk.bf16.mxu0 %vm703_vm3, %v4839_v31  ;;  %v2519_v7 = vsel %vm752_vm0, %v5309_v6, 0  ;;  %v1233_v46 = vrot.slane %v4132_v25, 5  ;;  %v3198_v18 = vrot.slane %v4133_v32, 9  ;;  %v1232_v43 = vrot.slane %v1230_v28, 4  ;;  %v4134_v2 = vld [vmem:[%s5249_s1 + $0x8] sm:$0x3] }
  0x7e   : > { %v1848_v33 = vrot.slane %v1847_v13, 4  ;;  %v1858_v39 = vrot.slane %v1857_v24, 4  ;;  %v1645_v35 = vsel %vm752_vm0, %v4778_v3, 0  ;;  %v5312_v3 = vld [vmem:[#allocation14_spill] sm:$0xff]  ;;  %v4999_v24 = vld [vmem:[%s4224_s27 + $0xcc] sm:$0xf] }
  0x7f   : > { %v1231_v55 = vsel %vm4452_vm7, %v3198_v18, %v1230_v28  ;;  %v1234_v12 = vsel %vm4452_vm7, %v1232_v43, %v1233_v46  ;;  %v5315_v13 = vld [vmem:[#allocation22_spill] sm:$0xff]  ;;  %v5002_v9 = vld [vmem:[%s4224_s27 + $0xd0] sm:$0xf]  ;;  %v2731_v10 = vsel %vm752_vm0, %v3339_v60, 0  ;;  %v5321_v42 = vld [vmem:[#allocation9_spill] sm:$0xff]  ;;  %v2490_v14 = vshll.u32 %v4999_v24, 16 }
  0x80   : > { %v1853_v15 = vsel %vm4271_vm4, %v1848_v33, %v1852_v11  ;;  %v1863_v27 = vsel %vm4271_vm4, %v1858_v39, %v1862_v58  ;;  %v3215_v59 = vcombine.low %v1231_v55, %v1234_v12  ;;  %v4988_v11 = vcombine.low %v4868_v17, %v4848_v61  ;;  %v5316_v17 = vld [vmem:[#allocation3_spill] sm:$0xff]  ;;  %v5317_v51 = vld [vmem:[#allocation4_spill] sm:$0xff]  ;;  %v5318_v33 = vld [vmem:[#allocation6_spill] sm:$0xff] }
  0x81   : > { %v4910_v16 = vcombine.low %v1853_v15, %v1863_v27  ;;  %v3303_v61 = vcombine.low %v4999_v24, %v5002_v9  ;;  %v5319_v39 = vld [vmem:[#allocation7_spill] sm:$0xff]  ;;  %v5320_v58 = vld [vmem:[#allocation8_spill] sm:$0xff]  ;;  %v5323_v27 = vld [vmem:[#allocation13_spill] sm:$0xff]  ;;  %v2500_v28 = vshrl.u32 %v5002_v9, 16  ;;  %v2492_v32 = vrot.slane %v2490_v14, 5 }
  0x82   : > { %v5322_v15 = vld [vmem:[#allocation11_spill] sm:$0xff]  ;;  %v5324_v6 = vld [vmem:[#allocation16_spill] sm:$0xff]  ;;  %v5326_v25 = vld [vmem:[#allocation2_spill] sm:$0xff]  ;;  %v2717_v34 = vrot.slane %v5002_v9, 5 }
  0x83   : > { %v5327_v46 = vld [vmem:[#allocation19_spill] sm:$0xff]  ;;  %v2502_v43 = vrot.slane %v2500_v28, 4  ;;  %v264_v55 = vld [vmem:[%s4224_s27 + $0xd4] sm:$0x1]  ;;  %v5328_v12 = vld [vmem:[#allocation21_spill] sm:$0xff] }
  0x84   : > { %3559 = vmatmul.mubr.msk.bf16.gmra.mrb[8].mxu1 %vm703_vm3, %v4873_v53  ;;  %3711 = vmatmul.mubr.msk.bf16.gmra.mrb[24].mxu0 %vm703_vm3, %v4875_v44 }
  0x85   : > { %3562 = vmatprep.mubr.msk.bf16.mxu1 %vm703_vm3, %v4879_v8  ;;  %3714 = vmatprep.mubr.msk.bf16.mxu0 %vm703_vm3, %v4885_v1 }
  0x8c   : > { %3563 = vmatmul.mubr.msk.bf16.gmra.mrb[12].mxu1 %vm703_vm3, %v4902_v40  ;;  %3715 = vmatmul.mubr.msk.bf16.gmra.mrb[28].mxu0 %vm703_vm3, %v4904_v19 }
  0x8d   : > { %3566 = vmatprep.mubr.msk.bf16.mxu1 %vm703_vm3, %v4798_v22  ;;  %3720 = vmatprep.mubr.msk.bf16.mxu0 %vm703_vm3, %v4766_v47 }
  0x94   : > { %3567 = vmatmul.mubr.msk.bf16.gmra.mrb[16].mxu1 %vm703_vm3, %v4808_v57  ;;  %3721 = vmatmul.mubr.msk.bf16.vlgmr.msra.gmra.mrb[0].mxu0 %vm703_vm3, %v4792_v23 }
  0x95   : > { %3753 = vmatpush3.bf16.msra.mxu0 %v2519_v7  ;;  %3570 = vmatprep.mubr.msk.bf16.mxu1 %vm703_vm3, %v4817_v5  ;;  %v5325_v7 = vld [vmem:[#allocation18_spill] sm:$0xff] }
  0x96   : > { %3724 = vmatprep.mubr.msk.bf16.mxu0 %vm703_vm3, %v4837_v56  ;;  %4087 = vmatprep.subr.msk.bf16.mxu0 %vm752_vm0, %v3339_v60  ;;  %v2487_v60 = vshrl.u32 %v4999_v24, 16 }
  0x9c   : > { %3571 = vmatmul.mubr.msk.bf16.gmra.mrb[20].mxu1 %vm703_vm3, %v4821_v49  ;;  %3725 = vmatmul.mubr.msk.bf16.gmra.mrb[4].mxu0 %vm703_vm3, %v4873_v53 }
  0x9d   : > { %3574 = vmatprep.mubr.msk.bf16.mxu1 %vm703_vm3, %v4825_v54  ;;  %3728 = vmatprep.mubr.msk.bf16.mxu0 %vm703_vm3, %v4879_v8 }
  0xa4   : > { %3575 = vmatmul.mubr.msk.bf16.gmra.mrb[24].mxu1 %vm703_vm3, %v4829_v36  ;;  %3729 = vmatmul.mubr.msk.bf16.gmra.mrb[8].mxu0 %vm703_vm3, %v4902_v40 }
  0xa5   : > { %3578 = vmatprep.mubr.msk.bf16.mxu1 %vm703_vm3, %v4833_v45  ;;  %3732 = vmatprep.mubr.msk.bf16.mxu0 %vm703_vm3, %v4798_v22 }
  0xac   : > { %3579 = vmatmul.mubr.msk.bf16.gmra.mrb[28].mxu1 %vm703_vm3, %v4843_v29  ;;  %3733 = vmatmul.mubr.msk.bf16.gmra.mrb[12].mxu0 %vm703_vm3, %v4808_v57 }
  0xad   : > { %3584 = vmatprep.mubr.msk.bf16.mxu1 %vm703_vm3, %v3215_v59  ;;  %3736 = vmatprep.mubr.msk.bf16.mxu0 %vm703_vm3, %v4817_v5 }
  0xb4   : > { %3585 = vmatmul.mubr.msk.bf16.vlgmr.msra.gmra.mrb[0].mxu1 %vm703_vm3, %v5310_v48  ;;  %3737 = vmatmul.mubr.msk.bf16.gmra.mrb[16].mxu0 %vm703_vm3, %v4821_v49 }
  0xb5   : > { %3617 = vmatpush3.bf16.msra.mxu1 %v1645_v35  ;;  %3588 = vmatprep.mubr.msk.bf16.mxu1 %vm703_vm3, %v5311_v52  ;;  %v2506_v35 = vshll.u32 %v264_v55, 16 }
  0xb6   : > { %3740 = vmatprep.mubr.msk.bf16.mxu0 %vm703_vm3, %v4825_v54  ;;  %4083 = vmatprep.subr.msk.bf16.mxu1 %vm752_vm0, %v4134_v2 }
  0xbc   : > { %3589 = vmatmul.mubr.msk.bf16.gmra.mrb[4].mxu1 %vm703_vm3, %v5312_v3  ;;  %3741 = vmatmul.mubr.msk.bf16.gmra.mrb[20].mxu0 %vm703_vm3, %v4829_v36 }
  0xbd   : > { %3592 = vmatprep.mubr.msk.bf16.mxu1 %vm703_vm3, %v5313_v4  ;;  %3744 = vmatprep.mubr.msk.bf16.mxu0 %vm703_vm3, %v4833_v45 }
  0xc4   : > { %3593 = vmatmul.mubr.msk.bf16.gmra.mrb[8].mxu1 %vm703_vm3, %v5314_v21  ;;  %3745 = vmatmul.mubr.msk.bf16.gmra.mrb[24].mxu0 %vm703_vm3, %v4843_v29 }
  0xc5   : > { %3596 = vmatprep.mubr.msk.bf16.mxu1 %vm703_vm3, %v5315_v13  ;;  %3748 = vmatprep.mubr.msk.bf16.mxu0 %vm703_vm3, %v4988_v11 }
  0xcc   : > { %3597 = vmatmul.mubr.msk.bf16.gmra.mrb[12].mxu1 %vm703_vm3, %v4703_v37  ;;  %3749 = vmatmul.mubr.msk.bf16.gmra.mrb[28].mxu0 %vm703_vm3, %v3303_v61  ;;  %v2508_v61 = vrot.slane %v2506_v35, 5 }
  0xcd   : > { %3600 = vmatprep.mubr.msk.bf16.mxu1 %vm703_vm3, %v4734_v41  ;;  %3754 = vmatprep.mubr.msk.bf16.mxu0 %vm703_vm3, %v5316_v17 }
  0xd4   : > { %3601 = vmatmul.mubr.msk.bf16.gmra.mrb[16].mxu1 %vm703_vm3, %v4738_v50  ;;  %3755 = vmatmul.mubr.msk.bf16.vlgmr.msra.gmra.mrb[0].mxu0 %vm703_vm3, %v5317_v51 }
  0xd5   : > { %3787 = vmatpush3.bf16.msra.mxu0 %v2731_v10  ;;  %3604 = vmatprep.mubr.msk.bf16.mxu1 %vm703_vm3, %v4760_v20 }
  0xd6   : > { %3758 = vmatprep.mubr.msk.bf16.mxu0 %vm703_vm3, %v5318_v33 }
  0xdc   : > { %3605 = vmatmul.mubr.msk.bf16.gmra.mrb[20].mxu1 %vm703_vm3, %v4771_v0  ;;  %3759 = vmatmul.mubr.msk.bf16.gmra.mrb[4].mxu0 %vm703_vm3, %v5319_v39 }
  0xdd   : > { %3608 = vmatprep.mubr.msk.bf16.mxu1 %vm703_vm3, %v4812_v62  ;;  %3762 = vmatprep.mubr.msk.bf16.mxu0 %vm703_vm3, %v5320_v58 }
  0xe4   : > { %3609 = vmatmul.mubr.msk.bf16.gmra.mrb[24].mxu1 %vm703_vm3, %v4839_v31  ;;  %3763 = vmatmul.mubr.msk.bf16.gmra.mrb[8].mxu0 %vm703_vm3, %v5321_v42 }
  0xe5   : > { %3612 = vmatprep.mubr.msk.bf16.mxu1 %vm703_vm3, %v4875_v44  ;;  %3766 = vmatprep.mubr.msk.bf16.mxu0 %vm703_vm3, %v5322_v15 }
  0xec   : > { %3613 = vmatmul.mubr.msk.bf16.gmra.mrb[28].mxu1 %vm703_vm3, %v4885_v1  ;;  %3767 = vmatmul.mubr.msk.bf16.gmra.mrb[12].mxu0 %vm703_vm3, %v5323_v27 }
  0xed   : > { %3618 = vmatprep.mubr.msk.bf16.mxu1 %vm703_vm3, %v4277_v38  ;;  %3770 = vmatprep.mubr.msk.bf16.mxu0 %vm703_vm3, %v5324_v6  ;;  %v2496_v38 = vshll.u32 %v5002_v9, 16 }
  0xef   : > { %v2498_v18 = vrot.slane %v2496_v38, 5 }
  0xf1   : > { %v2503_v59 = vor.u32 %v2502_v43, %v2498_v18 }
  0xf3   : > { %v2504_v2 = vrot.slane %v2503_v59, 4 }
  0xf4   : > { %3619 = vmatmul.mubr.msk.bf16.vlgmr.msra.gmra.mrb[0].mxu1 %vm703_vm3, %v4766_v47  ;;  %3771 = vmatmul.mubr.msk.bf16.gmra.mrb[16].mxu0 %vm703_vm3, %v5325_v7  ;;  %v2489_v47 = vrot.slane %v2487_v60, 4 }
  0xf5   : > { %3821 = vmatpush3.bf16.msra.mxu1 %v5326_v25  ;;  %3622 = vmatprep.mubr.msk.bf16.mxu1 %vm703_vm3, %v4792_v23 }
  0xf6   : > { %3774 = vmatprep.mubr.msk.bf16.mxu0 %vm703_vm3, %v5327_v46  ;;  %v2493_v23 = vor.u32 %v2492_v32, %v2489_v47 }
  0xf8   : > { %v2494_v48 = vrot.slane %v2493_v23, 4 }
  0xfc   : > { %3623 = vmatmul.mubr.msk.bf16.gmra.mrb[4].mxu1 %vm703_vm3, %v4837_v56  ;;  %3775 = vmatmul.mubr.msk.bf16.gmra.mrb[20].mxu0 %vm703_vm3, %v5328_v12  ;;  %v2499_v56 = vsel %vm4271_vm4, %v2494_v48, %v2498_v18 }
  0xfd   : > { %3626 = vmatprep.mubr.msk.bf16.mxu1 %vm703_vm3, %v4873_v53  ;;  %3778 = vmatprep.mubr.msk.bf16.mxu0 %vm703_vm3, %v4705_v30  ;;  %v2509_v53 = vsel %vm4271_vm4, %v2504_v2, %v2508_v61 }
  0xfe   : > { %v3321_v17 = vcombine.low %v2499_v56, %v2509_v53 }
 0x104   : > { %3627 = vmatmul.mubr.msk.bf16.gmra.mrb[8].mxu1 %vm703_vm3, %v4879_v8  ;;  %3779 = vmatmul.mubr.msk.bf16.gmra.mrb[24].mxu0 %vm703_vm3, %v4732_v63 }
 0x105   : > { %3630 = vmatprep.mubr.msk.bf16.mxu1 %vm703_vm3, %v4902_v40  ;;  %3782 = vmatprep.mubr.msk.bf16.mxu0 %vm703_vm3, %v4910_v16 }
 0x10c   : > { %3631 = vmatmul.mubr.msk.bf16.gmra.mrb[12].mxu1 %vm703_vm3, %v4798_v22  ;;  %3783 = vmatmul.mubr.msk.bf16.gmra.mrb[28].mxu0 %vm703_vm3, %v3321_v17 }
 0x10d   : > { %3634 = vmatprep.mubr.msk.bf16.mxu1 %vm703_vm3, %v4808_v57  ;;  %3788 = vmatprep.mubr.msk.bf16.mxu0 %vm703_vm3, %v5311_v52 }
 0x114   : > { %3635 = vmatmul.mubr.msk.bf16.gmra.mrb[16].mxu1 %vm703_vm3, %v4817_v5  ;;  %3789 = vmatmul.mubr.msk.bf16.vlgmr.msra.gmra.mrb[0].mxu0 %vm703_vm3, %v5312_v3 }
 0x115   : > { %3638 = vmatprep.mubr.msk.bf16.mxu1 %vm703_vm3, %v4821_v49  ;;  %3792 = vmatprep.mubr.msk.bf16.mxu0 %vm703_vm3, %v5313_v4 }
 0x11c   : > { %3639 = vmatmul.mubr.msk.bf16.gmra.mrb[20].mxu1 %vm703_vm3, %v4825_v54  ;;  %3793 = vmatmul.mubr.msk.bf16.gmra.mrb[4].mxu0 %vm703_vm3, %v5314_v21 }
 0x11d   : > { %3642 = vmatprep.mubr.msk.bf16.mxu1 %vm703_vm3, %v4829_v36  ;;  %3796 = vmatprep.mubr.msk.bf16.mxu0 %vm703_vm3, %v5315_v13 }
 0x124   : > { %3643 = vmatmul.mubr.msk.bf16.gmra.mrb[24].mxu1 %vm703_vm3, %v4833_v45  ;;  %3797 = vmatmul.mubr.msk.bf16.gmra.mrb[8].mxu0 %vm703_vm3, %v4703_v37  ;;  %v3338_v37 = vrot.slane %v4999_v24, 9 }
 0x125   : > { %3646 = vmatprep.mubr.msk.bf16.mxu1 %vm703_vm3, %v4843_v29  ;;  %3800 = vmatprep.mubr.msk.bf16.mxu0 %vm703_vm3, %v4734_v41  ;;  %v2719_v41 = vrot.slane %v2717_v34, 4 }
 0x12c   : > { %3647 = vmatmul.mubr.msk.bf16.gmra.mrb[28].mxu1 %vm703_vm3, %v4988_v11  ;;  %3801 = vmatmul.mubr.msk.bf16.gmra.mrb[12].mxu0 %vm703_vm3, %v4738_v50  ;;  %v2720_v50 = vrot.slane %v264_v55, 5 }
 0x12d   : > { %3668 = vmatprep.mubr.msk.bf16.mxu1 %vm703_vm3, %v5323_v27  ;;  %3804 = vmatprep.mubr.msk.bf16.mxu0 %vm703_vm3, %v4760_v20  ;;  %v2718_v20 = vsel %vm4452_vm7, %v3338_v37, %v2717_v34 }
 0x134   : > { %3669 = vmatmul.mubr.msk.bf16.vlgmr.msra.gmra.mrb[16].mxu1 %vm703_vm3, %v5324_v6  ;;  %3805 = vmatmul.mubr.msk.bf16.gmra.mrb[16].mxu0 %vm703_vm3, %v4771_v0  ;;  %v2721_v0 = vsel %vm4452_vm7, %v2719_v41, %v2720_v50 }
 0x135   : > { %3672 = vmatprep.mubr.msk.bf16.mxu1 %vm703_vm3, %v5325_v7  ;;  %3808 = vmatprep.mubr.msk.bf16.mxu0 %vm703_vm3, %v4812_v62  ;;  %v3340_v22 = vcombine.low %v2718_v20, %v2721_v0 }
 0x13c   : > { %3673 = vmatmul.mubr.msk.bf16.gmra.mrb[20].mxu1 %vm703_vm3, %v5327_v46  ;;  %3809 = vmatmul.mubr.msk.bf16.gmra.mrb[20].mxu0 %vm703_vm3, %v4839_v31 }
 0x13d   : > { %3676 = vmatprep.mubr.msk.bf16.mxu1 %vm703_vm3, %v5328_v12  ;;  %3812 = vmatprep.mubr.msk.bf16.mxu0 %vm703_vm3, %v4875_v44 }
 0x144   : > { %3677 = vmatmul.mubr.msk.bf16.gmra.mrb[24].mxu1 %vm703_vm3, %v4705_v30  ;;  %3813 = vmatmul.mubr.msk.bf16.gmra.mrb[24].mxu0 %vm703_vm3, %v4885_v1 }
 0x145   : > { %3680 = vmatprep.mubr.msk.bf16.mxu1 %vm703_vm3, %v4732_v63  ;;  %3816 = vmatprep.mubr.msk.bf16.mxu0 %vm703_vm3, %v4904_v19 }
 0x14c   : > { %3681 = vmatmul.mubr.msk.bf16.gmra.mrb[28].mxu1 %vm703_vm3, %v4910_v16  ;;  %3817 = vmatmul.mubr.msk.bf16.gmra.mrb[28].mxu0 %vm703_vm3, %v3340_v22  ;;  %v5163_v16 = vld [vmem:[%s5250_s2] ss:$0 sm:$0xff] }
 0x1c7   : > { %v3620_v30 = vpop.f32.mrb[0].mxu1 }
 0x1c8   : > { %v1681_v57 = vpop.f32.mrb[1].mxu1 }
 0x1c9   : > { %v3621_v62 = vpop.f32.mrb[2].mxu1 }
 0x1ca   : > { %v1684_v63 = vpop.f32.mrb[3].mxu1 }
 0x1cf   : > { %v3624_v5 = vpop.f32.mrb[4].mxu1 }
 0x1d0   : > { %v1697_v49 = vpop.f32.mrb[5].mxu1 }
 0x1d1   : > { %v3625_v54 = vpop.f32.mrb[6].mxu1 }
 0x1d2   : > { %v1700_v36 = vpop.f32.mrb[7].mxu1 }
 0x1d7   : > { %v3628_v45 = vpop.f32.mrb[8].mxu1 }
 0x1d8   : > { %v1713_v31 = vpop.f32.mrb[9].mxu1 }
 0x1d9   : > { %v3629_v29 = vpop.f32.mrb[10].mxu1 }
 0x1da   : > { %v1716_v26 = vpop.f32.mrb[11].mxu1 }
 0x1df   : > { %v5152_v44 = vpop.f32.mrb[12].mxu1 }
 0x1e0   : > { %v5154_v8 = vpop.f32.mrb[13].mxu1 }
 0x1e1   : > { %v5156_v1 = vpop.f32.mrb[14].mxu1 }
 0x1e2   : > { %v5158_v40 = vpop.f32.mrb[15].mxu1 }
 0x1e7   : > { %v3790_v19 = vpop.f32.mrb[0].mxu0 }
 0x1e8   : > { %v3822_v52 = vadd.f32 %v3790_v19, %v3620_v30  ;;  %v2767_v3 = vpop.f32.mrb[1].mxu0 }
 0x1e9   : > { %v3823_v4 = vadd.f32 %v2767_v3, %v1681_v57  ;;  %v3791_v11 = vpop.f32.mrb[2].mxu0 }
 0x1ea   : > { %v2935_v21 = vadd.f32 %v3822_v52, %v5163_v16  ;;  %v3824_v13 = vadd.f32 %v3791_v11, %v3621_v62  ;;  %v2770_v24 = vpop.f32.mrb[3].mxu0 }
 0x1eb   : > { %v2933_v9 = vadd.f32 %v3823_v4, %v5163_v16  ;;  %v3825_v10 = vadd.f32 %v2770_v24, %v1684_v63 }
 0x1ec   : > { %v2967_v51 = vmax.f32 %v2935_v21, 0.0  ;;  %v2936_v33 = vadd.f32 %v3824_v13, %v5163_v16 }
 0x1ed   : > { %v2965_v39 = vmax.f32 %v2933_v9, 0.0  ;;  %v2934_v58 = vadd.f32 %v3825_v10, %v5163_v16 }
 0x1ee   : > { %2999 = vst [vmem:[%s5170_s22 + $0x10] sm:$0xff] %v2967_v51  ;;  %v2968_v42 = vmax.f32 %v2936_v33, 0.0 }
 0x1ef   : > { %2997 = vst [vmem:[%s5170_s22] sm:$0xff] %v2965_v39  ;;  %v2966_v15 = vmax.f32 %v2934_v58, 0.0  ;;  %v3794_v27 = vpop.f32.mrb[4].mxu0 }
 0x1f0   : > { %3000 = vst [vmem:[%s5170_s22 + $0x18] sm:$0xff] %v2968_v42  ;;  %v3826_v6 = vadd.f32 %v3794_v27, %v3624_v5  ;;  %v2783_v7 = vpop.f32.mrb[5].mxu0 }
 0x1f1   : > { %2998 = vst [vmem:[%s5170_s22 + $0x8] sm:$0xff] %v2966_v15  ;;  %v3827_v60 = vadd.f32 %v2783_v7, %v1697_v49  ;;  %v3795_v14 = vpop.f32.mrb[6].mxu0 }
 0x1f2   : > { %v2939_v28 = vadd.f32 %v3826_v6, %v5163_v16  ;;  %v3828_v25 = vadd.f32 %v3795_v14, %v3625_v54  ;;  %v2786_v38 = vpop.f32.mrb[7].mxu0 }
 0x1f3   : > { %v2937_v46 = vadd.f32 %v3827_v60, %v5163_v16  ;;  %v3829_v47 = vadd.f32 %v2786_v38, %v1700_v36 }
 0x1f4   : > { %v2971_v32 = vmax.f32 %v2939_v28, 0.0  ;;  %v2940_v18 = vadd.f32 %v3828_v25, %v5163_v16 }
 0x1f5   : > { %v2969_v43 = vmax.f32 %v2937_v46, 0.0  ;;  %v2938_v55 = vadd.f32 %v3829_v47, %v5163_v16 }
 0x1f6   : > { %3003 = vst [vmem:[%s5170_s22 + $0x30] sm:$0xff] %v2971_v32  ;;  %v2972_v12 = vmax.f32 %v2940_v18, 0.0 }
 0x1f7   : > { %3001 = vst [vmem:[%s5170_s22 + $0x20] sm:$0xff] %v2969_v43  ;;  %v2970_v23 = vmax.f32 %v2938_v55, 0.0  ;;  %v3798_v59 = vpop.f32.mrb[8].mxu0 }
 0x1f8   : > { %3004 = vst [vmem:[%s5170_s22 + $0x38] sm:$0xff] %v2972_v12  ;;  %v3830_v35 = vadd.f32 %v3798_v59, %v3628_v45  ;;  %v2799_v48 = vpop.f32.mrb[9].mxu0 }
 0x1f9   : > { %3002 = vst [vmem:[%s5170_s22 + $0x28] sm:$0xff] %v2970_v23  ;;  %v3831_v2 = vadd.f32 %v2799_v48, %v1713_v31  ;;  %v3799_v61 = vpop.f32.mrb[10].mxu0 }
 0x1fa   : > { %v2943_v56 = vadd.f32 %v3830_v35, %v5163_v16  ;;  %v3832_v53 = vadd.f32 %v3799_v61, %v3629_v29  ;;  %v2802_v17 = vpop.f32.mrb[11].mxu0 }
 0x1fb   : > { %v2941_v34 = vadd.f32 %v3831_v2, %v5163_v16  ;;  %v3833_v37 = vadd.f32 %v2802_v17, %v1716_v26 }
 0x1fc   : > { %v2975_v41 = vmax.f32 %v2943_v56, 0.0  ;;  %v2944_v50 = vadd.f32 %v3832_v53, %v5163_v16 }
 0x1fd   : > { %v2973_v20 = vmax.f32 %v2941_v34, 0.0  ;;  %v2942_v0 = vadd.f32 %v3833_v37, %v5163_v16 }
 0x1fe   : > { %3007 = vst [vmem:[%s5170_s22 + $0x50] sm:$0xff] %v2975_v41  ;;  %v2976_v22 = vmax.f32 %v2944_v50, 0.0 }
 0x1ff   : > { %3005 = vst [vmem:[%s5170_s22 + $0x40] sm:$0xff] %v2973_v20  ;;  %v2974_v30 = vmax.f32 %v2942_v0, 0.0  ;;  %v3802_v57 = vpop.f32.mrb[12].mxu0 }
 0x200   : > { %3008 = vst [vmem:[%s5170_s22 + $0x58] sm:$0xff] %v2976_v22  ;;  %v3834_v62 = vadd.f32 %v3802_v57, %v5152_v44  ;;  %v2815_v63 = vpop.f32.mrb[13].mxu0 }
 0x201   : > { %3006 = vst [vmem:[%s5170_s22 + $0x48] sm:$0xff] %v2974_v30  ;;  %v3835_v5 = vadd.f32 %v2815_v63, %v5154_v8  ;;  %v3803_v49 = vpop.f32.mrb[14].mxu0 }
 0x202   : > { %v2947_v54 = vadd.f32 %v3834_v62, %v5163_v16  ;;  %v3836_v36 = vadd.f32 %v3803_v49, %v5156_v1  ;;  %v2818_v45 = vpop.f32.mrb[15].mxu0 }
 0x203   : > { %v2945_v31 = vadd.f32 %v3835_v5, %v5163_v16  ;;  %v3837_v29 = vadd.f32 %v2818_v45, %v5158_v40 }
 0x204   : > { %v2979_v26 = vmax.f32 %v2947_v54, 0.0  ;;  %v2948_v44 = vadd.f32 %v3836_v36, %v5163_v16 }
 0x205   : > { %v2977_v19 = vmax.f32 %v2945_v31, 0.0  ;;  %v2946_v52 = vadd.f32 %v3837_v29, %v5163_v16 }
 0x206   : > { %3011 = vst [vmem:[%s5170_s22 + $0x70] sm:$0xff] %v2979_v26  ;;  %v2980_v8 = vmax.f32 %v2948_v44, 0.0 }
 0x207   : > { %3009 = vst [vmem:[%s5170_s22 + $0x60] sm:$0xff] %v2977_v19  ;;  %v2978_v3 = vmax.f32 %v2946_v52, 0.0  ;;  %v3670_v4 = vpop.f32.mrb[16].mxu1  ;;  %v3806_v11 = vpop.f32.mrb[16].mxu0 }
 0x208   : > { %3012 = vst [vmem:[%s5170_s22 + $0x78] sm:$0xff] %v2980_v8  ;;  %v3838_v1 = vadd.f32 %v3806_v11, %v3670_v4  ;;  %v1973_v21 = vpop.f32.mrb[17].mxu1  ;;  %v2831_v13 = vpop.f32.mrb[17].mxu0 }
 0x209   : > { %3010 = vst [vmem:[%s5170_s22 + $0x68] sm:$0xff] %v2978_v3  ;;  %v3839_v40 = vadd.f32 %v2831_v13, %v1973_v21  ;;  %v3671_v24 = vpop.f32.mrb[18].mxu1  ;;  %v3807_v9 = vpop.f32.mrb[18].mxu0 }
 0x20a   : > { %v2951_v10 = vadd.f32 %v3838_v1, %v5163_v16  ;;  %v3840_v51 = vadd.f32 %v3807_v9, %v3671_v24  ;;  %v1976_v33 = vpop.f32.mrb[19].mxu1  ;;  %v2834_v39 = vpop.f32.mrb[19].mxu0 }
 0x20b   : > { %v2949_v58 = vadd.f32 %v3839_v40, %v5163_v16  ;;  %v3841_v42 = vadd.f32 %v2834_v39, %v1976_v33 }
 0x20c   : > { %v2983_v15 = vmax.f32 %v2951_v10, 0.0  ;;  %v2952_v27 = vadd.f32 %v3840_v51, %v5163_v16 }
 0x20d   : > { %v2981_v6 = vmax.f32 %v2949_v58, 0.0  ;;  %v2950_v7 = vadd.f32 %v3841_v42, %v5163_v16 }
 0x20e   : > { %3015 = vst [vmem:[%s5170_s22 + $0x90] sm:$0xff] %v2983_v15  ;;  %v2984_v60 = vmax.f32 %v2952_v27, 0.0 }
 0x20f   : > { %3013 = vst [vmem:[%s5170_s22 + $0x80] sm:$0xff] %v2981_v6  ;;  %v2982_v14 = vmax.f32 %v2950_v7, 0.0  ;;  %v3674_v28 = vpop.f32.mrb[20].mxu1  ;;  %v3810_v25 = vpop.f32.mrb[20].mxu0 }
 0x210   : > { %3016 = vst [vmem:[%s5170_s22 + $0x98] sm:$0xff] %v2984_v60  ;;  %v3842_v38 = vadd.f32 %v3810_v25, %v3674_v28  ;;  %v1989_v46 = vpop.f32.mrb[21].mxu1  ;;  %v2847_v47 = vpop.f32.mrb[21].mxu0 }
 0x211   : > { %3014 = vst [vmem:[%s5170_s22 + $0x88] sm:$0xff] %v2982_v14  ;;  %v3843_v32 = vadd.f32 %v2847_v47, %v1989_v46  ;;  %v3675_v18 = vpop.f32.mrb[22].mxu1  ;;  %v3811_v43 = vpop.f32.mrb[22].mxu0 }
 0x212   : > { %v2955_v55 = vadd.f32 %v3842_v38, %v5163_v16  ;;  %v3844_v12 = vadd.f32 %v3811_v43, %v3675_v18  ;;  %v1992_v23 = vpop.f32.mrb[23].mxu1  ;;  %v2850_v59 = vpop.f32.mrb[23].mxu0 }
 0x213   : > { %v2953_v35 = vadd.f32 %v3843_v32, %v5163_v16  ;;  %v3845_v48 = vadd.f32 %v2850_v59, %v1992_v23 }
 0x214   : > { %v2987_v2 = vmax.f32 %v2955_v55, 0.0  ;;  %v2956_v61 = vadd.f32 %v3844_v12, %v5163_v16 }
 0x215   : > { %v2985_v56 = vmax.f32 %v2953_v35, 0.0  ;;  %v2954_v53 = vadd.f32 %v3845_v48, %v5163_v16 }
 0x216   : > { %3019 = vst [vmem:[%s5170_s22 + $0xb0] sm:$0xff] %v2987_v2  ;;  %v2988_v17 = vmax.f32 %v2956_v61, 0.0 }
 0x217   : > { %3017 = vst [vmem:[%s5170_s22 + $0xa0] sm:$0xff] %v2985_v56  ;;  %v2986_v34 = vmax.f32 %v2954_v53, 0.0  ;;  %v3678_v37 = vpop.f32.mrb[24].mxu1  ;;  %v3814_v41 = vpop.f32.mrb[24].mxu0 }
 0x218   : > { %3020 = vst [vmem:[%s5170_s22 + $0xb8] sm:$0xff] %v2988_v17  ;;  %v3846_v50 = vadd.f32 %v3814_v41, %v3678_v37  ;;  %v2005_v20 = vpop.f32.mrb[25].mxu1  ;;  %v2863_v0 = vpop.f32.mrb[25].mxu0 }
 0x219   : > { %3018 = vst [vmem:[%s5170_s22 + $0xa8] sm:$0xff] %v2986_v34  ;;  %v3847_v22 = vadd.f32 %v2863_v0, %v2005_v20  ;;  %v3679_v30 = vpop.f32.mrb[26].mxu1  ;;  %v3815_v57 = vpop.f32.mrb[26].mxu0 }
 0x21a   : > { %v2959_v62 = vadd.f32 %v3846_v50, %v5163_v16  ;;  %v3848_v63 = vadd.f32 %v3815_v57, %v3679_v30  ;;  %v2008_v5 = vpop.f32.mrb[27].mxu1  ;;  %v2866_v49 = vpop.f32.mrb[27].mxu0 }
 0x21b   : > { %v2957_v54 = vadd.f32 %v3847_v22, %v5163_v16  ;;  %v3849_v36 = vadd.f32 %v2866_v49, %v2008_v5 }
 0x21c   : > { %v2991_v45 = vmax.f32 %v2959_v62, 0.0  ;;  %v2960_v31 = vadd.f32 %v3848_v63, %v5163_v16 }
 0x21d   : > { %v2989_v29 = vmax.f32 %v2957_v54, 0.0  ;;  %v2958_v26 = vadd.f32 %v3849_v36, %v5163_v16 }
 0x21e   : > { %3023 = vst [vmem:[%s5170_s22 + $0xd0] sm:$0xff] %v2991_v45  ;;  %v2992_v44 = vmax.f32 %v2960_v31, 0.0 }
 0x21f   : > { %3021 = vst [vmem:[%s5170_s22 + $0xc0] sm:$0xff] %v2989_v29  ;;  %v2990_v19 = vmax.f32 %v2958_v26, 0.0  ;;  %v3682_v52 = vpop.f32.mrb[28].mxu1  ;;  %v3818_v8 = vpop.f32.mrb[28].mxu0 }
 0x220   : > { %3024 = vst [vmem:[%s5170_s22 + $0xd8] sm:$0xff] %v2992_v44  ;;  %v3850_v3 = vadd.f32 %v3818_v8, %v3682_v52  ;;  %v2021_v4 = vpop.f32.mrb[29].mxu1  ;;  %v2879_v11 = vpop.f32.mrb[29].mxu0 }
 0x221   : > { %3022 = vst [vmem:[%s5170_s22 + $0xc8] sm:$0xff] %v2990_v19  ;;  %v3851_v1 = vadd.f32 %v2879_v11, %v2021_v4  ;;  %v3683_v21 = vpop.f32.mrb[30].mxu1  ;;  %v3819_v13 = vpop.f32.mrb[30].mxu0 }
 0x222   : > { %v2963_v40 = vadd.f32 %v3850_v3, %v5163_v16  ;;  %v3852_v24 = vadd.f32 %v3819_v13, %v3683_v21  ;;  %v2024_v9 = vpop.f32.mrb[31].mxu1  ;;  %v2882_v10 = vpop.f32.mrb[31].mxu0 }
 0x223   : > { %v2961_v51 = vadd.f32 %v3851_v1, %v5163_v16  ;;  %v3853_v33 = vadd.f32 %v2882_v10, %v2024_v9 }
 0x224   : > { %v2995_v39 = vmax.f32 %v2963_v40, 0.0  ;;  %v2964_v58 = vadd.f32 %v3852_v24, %v5163_v16 }
 0x225   : > { %v2993_v42 = vmax.f32 %v2961_v51, 0.0  ;;  %v2962_v15 = vadd.f32 %v3853_v33, %v5163_v16 }
 0x226   : > { %3027 = vst [vmem:[%s5170_s22 + $0xf0] sm:$0xff] %v2995_v39  ;;  %v2996_v27 = vmax.f32 %v2964_v58, 0.0 }
 0x227   : > { %3025 = vst [vmem:[%s5170_s22 + $0xe0] sm:$0xff] %v2993_v42  ;;  %v2994_v6 = vmax.f32 %v2962_v15, 0.0 }
 0x228   : > { %3028 = vst [vmem:[%s5170_s22 + $0xf8] sm:$0xff] %v2996_v27 }
 0x229   : > { %3026 = vst [vmem:[%s5170_s22 + $0xe8] sm:$0xff] %v2994_v6 }
 0x22a PF: > { %s13_s14 = sadd.s32 1, %s4157_s14   ;;  %s5329_s12 = smov %s4153_s13 }
 0x22b   : > { %p10_p5 = scmp.ge.s32.totalorder %s13_s14, 4   ;;  %s5330_s13 = smov %s5332_s15 }
 0x22d   :  { %12 = sbr.rel (!%p10_p5) target bundleno = 2 (0x2), region = 70 }

</bundles_post_ra>
